<compile_context>
chip_gen: v5e
topology: v5e:2x2
jax: 0.10.0
libtpu: 0.0.40
codegen_flags: <defaults>
</compile_context>

<pallas_src>
import jax
import jax.numpy as jnp
from jax.experimental import pallas as pl
from jax.experimental.pallas import tpu as pltpu


# VMEM ceiling: well above the 16/32 MiB scoped defaults (v5e/v6e) so large row
# tiles + resident weights fit, but inside v7x's 64 MiB physical VMEM.
_VMEM_LIMIT_BYTES = 56 * 1024 * 1024


# ----------------------------------------------------------------------------
# tiling helpers
# ----------------------------------------------------------------------------
def _round_up(x, m):
    return (x + m - 1) // m * m


def _pick_tile(m):
    """Row tile (multiple of 16: bf16 sublane packing).

    Big tiles amortize the ~0.35us per-grid-step overhead (128-row tiles only
    reach ~29% of HBM roofline vs ~85% at 512), but whenever M > 8 we keep at
    least 2 row tiles so the parallel grid axis can feed both v7x TensorCores.
    """
    m16 = _round_up(max(m, 16), 16)
    if m <= 8:
        return m16, m16                         # single tiny tile
    if m16 <= 1024:
        tm = _round_up((m16 + 1) // 2, 16)      # exactly 2 tiles
        return tm, 2 * tm
    tm = 512                                     # 512-1024 fine on v5e/v6e; 512 fits v7x VMEM
    return tm, _round_up(m16, tm)


def _pad_rows(x, m_pad, axis=0):
    pad = m_pad - x.shape[axis]
    if pad == 0:
        return x
    widths = [(0, 0)] * x.ndim
    widths[axis] = (0, pad)
    return jnp.pad(x, widths)


# ----------------------------------------------------------------------------
# Kernel 1: fused rel chain (three dependent Linear + ReLU + mask)
# ----------------------------------------------------------------------------
def _rel_chain_kernel(sbj_ref, obj_ref, rel_ref, keep_ref, w_ref, b_ref,
                      osbj_ref, oobj_ref, orel_ref):
    keep = keep_ref[...]                        # (tm, 1) f32
    obj0 = obj_ref[...]                         # (tm, D) bf16
    relw = rel_ref[...]                         # (tm, D) bf16

    def fc(x1, x2, x3, k):
        # One K=3D dot per FC: the (tm, 3D) concat lives only in VMEM/vregs and
        # fills the 256-wide MXU K dim on v6e/v7x.  (On v5e three split-K dots
        # against its 128-wide MXUs would be an equivalent alternative.)
        xcat = jnp.concatenate([x1, x2, x3], axis=-1)            # (tm, 3D) bf16
        y = jnp.dot(xcat, w_ref[k], preferred_element_type=jnp.float32) + b_ref[k]
        return jnp.maximum(y, 0.0) * keep       # ReLU then masked_fill(0)

    y_sbj = fc(sbj_ref[...], obj0, relw, 0)
    sbj_b = y_sbj.astype(jnp.bfloat16)          # chained operand (and bf16 output)
    y_obj = fc(sbj_b, obj0, relw, 1)
    obj_b = y_obj.astype(jnp.bfloat16)
    y_rel = fc(sbj_b, obj_b, relw, 2)

    osbj_ref[...] = sbj_b                       # bf16: only feeds one-hot scatter
    oobj_ref[...] = obj_b                       # bf16: only feeds one-hot scatter
    orel_ref[...] = y_rel                       # f32: goes straight into ssg_feat


def rel_chain(sbj0, obj0, relemb, keep, w_all, b_all):
    """sbj0/obj0/relemb: (M, D) bf16; keep: (M, 1) f32;
       w_all: (3, 3D, D) bf16; b_all: (3, 1, D) f32.
       Returns sbj (M, D) bf16, obj (M, D) bf16, rel (M, D) f32."""
    M, D = sbj0.shape
    tm, m_pad = _pick_tile(M)
    sbj0 = _pad_rows(sbj0, m_pad)
    obj0 = _pad_rows(obj0, m_pad)
    relemb = _pad_rows(relemb, m_pad)
    keep = _pad_rows(keep, m_pad)

    row = pl.BlockSpec((tm, D), lambda i: (i, 0))
    out = pl.pallas_call(
        _rel_chain_kernel,
        out_shape=(jax.ShapeDtypeStruct((m_pad, D), jnp.bfloat16),
                   jax.ShapeDtypeStruct((m_pad, D), jnp.bfloat16),
                   jax.ShapeDtypeStruct((m_pad, D), jnp.float32)),
        grid_spec=pltpu.PrefetchScalarGridSpec(
            num_scalar_prefetch=0,
            grid=(m_pad // tm,),
            in_specs=[
                row, row, row,
                pl.BlockSpec((tm, 1), lambda i: (i, 0)),            # keep mask
                pl.BlockSpec((3, 3 * D, D), lambda i: (0, 0, 0)),   # resident weights
                pl.BlockSpec((3, 1, D), lambda i: (0, 0, 0)),       # biases
            ],
            out_specs=[row, row, row],
        ),
        # NOTE: for d_model >= 1024 add a K/N grid axis (K-tiled weights) and
        # single-buffer the constant-index weight specs so the resident
        # (3, 3D, D) block stays inside v7x's 64 MiB VMEM.
        compiler_params=pltpu.CompilerParams(
            dimension_semantics=("parallel",),
            vmem_limit_bytes=_VMEM_LIMIT_BYTES),
    )(sbj0, obj0, relemb, keep, w_all, b_all)
    return tuple(o[:M] for o in out)


# ----------------------------------------------------------------------------
# Kernel 2: fused obj FC + attr FC (+ in-kernel sum over attributes)
# ----------------------------------------------------------------------------
def _obj_attr_kernel(obj_ref, kobj_ref, attr_ref, katt_ref,
                     wobj2_ref, bobj_ref, watt1_ref, batt_ref,
                     objfeat_ref, attrsum_ref):
    obj = obj_ref[...]                                            # (tm, D) bf16
    d = obj.shape[1]

    # One N=2D dot: [obj FC | obj-side attr partial] share a single MXU pass.
    p = jnp.dot(obj, wobj2_ref[...], preferred_element_type=jnp.float32)  # (tm, 2D)
    objfeat_ref[...] = jnp.maximum(p[:, :d] + bobj_ref[...], 0.0) * kobj_ref[...]
    objpart = p[:, d:]                                            # (tm, D)

    watt1 = watt1_ref[...]                                        # (D, D) bf16
    batt = batt_ref[...]                                          # (1, D) f32
    katt = katt_ref[...]                                          # (tm, N_att) f32
    n_att = katt.shape[1]

    # Attribute loop folded into the body (no N_att grid axis): one dot per
    # attribute against the shared attr-side weight; running sum == the
    # reference's attr_feat.sum(dim=2).  N_att is small and static.
    acc = jnp.zeros_like(objpart)
    for a in range(n_att):
        y = objpart + jnp.dot(attr_ref[:, a, :], watt1,
                              preferred_element_type=jnp.float32) + batt
        acc = acc + jnp.maximum(y, 0.0) * katt[:, a:a + 1]
    attrsum_ref[...] = acc


def obj_attr_fused(obj_emb, keep_obj, attr_emb, keep_att,
                   w_obj2, b_obj, w_att1, b_att):
    """obj_emb (M, D) bf16, keep_obj (M, 1) f32,
       attr_emb (M, N_att, D) bf16 (no transpose needed), keep_att (M, N_att) f32,
       w_obj2 (D, 2D) bf16 = [obj_fc.W | att_fc.W_obj], b_obj (1, D) f32,
       w_att1 (D, D) bf16 = att_fc.W_attr, b_att (1, D) f32.
       Returns obj_feat (M, D) f32 and attr_sum (M, D) f32."""
    M, D = obj_emb.shape
    N_att = attr_emb.shape[1]
    tm, m_pad = _pick_tile(M)
    obj_emb = _pad_rows(obj_emb, m_pad)
    keep_obj = _pad_rows(keep_obj, m_pad)
    attr_emb = _pad_rows(attr_emb, m_pad)
    keep_att = _pad_rows(keep_att, m_pad)

    objfeat, attrsum = pl.pallas_call(
        _obj_attr_kernel,
        out_shape=(jax.ShapeDtypeStruct((m_pad, D), jnp.float32),
                   jax.ShapeDtypeStruct((m_pad, D), jnp.float32)),
        grid_spec=pltpu.PrefetchScalarGridSpec(
            num_scalar_prefetch=0,
            grid=(m_pad // tm,),
            in_specs=[
                pl.BlockSpec((tm, D), lambda i: (i, 0)),
                pl.BlockSpec((tm, 1), lambda i: (i, 0)),
                pl.BlockSpec((tm, N_att, D), lambda i: (i, 0, 0)),   # contiguous slab
                pl.BlockSpec((tm, N_att), lambda i: (i, 0)),
                pl.BlockSpec((D, 2 * D), lambda i: (0, 0)),          # resident weights
                pl.BlockSpec((1, D), lambda i: (0, 0)),
                pl.BlockSpec((D, D), lambda i: (0, 0)),
                pl.BlockSpec((1, D), lambda i: (0, 0)),
            ],
            out_specs=[pl.BlockSpec((tm, D), lambda i: (i, 0)),
                       pl.BlockSpec((tm, D), lambda i: (i, 0))],
        ),
        compiler_params=pltpu.CompilerParams(
            dimension_semantics=("parallel",),
            vmem_limit_bytes=_VMEM_LIMIT_BYTES),
    )(obj_emb, keep_obj, attr_emb, keep_att, w_obj2, b_obj, w_att1, b_att)
    return objfeat[:M], attrsum[:M]


# ----------------------------------------------------------------------------
# Parameter packing (done ONCE outside the jitted forward: bf16 word_emb,
# stacked rel weights, obj/attr weight concat -> no per-call repack / casts)
# ----------------------------------------------------------------------------
def prepare_params(params):
    D = params["word_emb"].shape[1]
    rel_w = jnp.stack([params["rel_sbj_w"], params["rel_obj_w"],
                       params["rel_rel_w"]], axis=0).astype(jnp.bfloat16)     # (3,3D,D)
    rel_b = jnp.stack([params["rel_sbj_b"], params["rel_obj_b"],
                       params["rel_rel_b"]], axis=0).reshape(3, 1, D).astype(jnp.float32)
    att_w = params["att_w"]                                                    # (2D, D)
    obj_att_w = jnp.concatenate([params["obj_w"], att_w[:D]],
                                axis=1).astype(jnp.bfloat16)                   # (D, 2D)
    return {
        "word_emb_bf16": params["word_emb"].astype(jnp.bfloat16),
        "rel_w": rel_w,
        "rel_b": rel_b,
        "obj_att_w": obj_att_w,
        "obj_b": params["obj_b"].reshape(1, D).astype(jnp.float32),
        "att_w1": att_w[D:].astype(jnp.bfloat16),                              # (D, D)
        "att_b": params["att_b"].reshape(1, D).astype(jnp.float32),
    }


# ----------------------------------------------------------------------------
# SSGModel forward (matches the PyTorch reference, eval mode / no dropout)
# ----------------------------------------------------------------------------
def ssg_forward(p, ssg_rel, ssg_obj, ssg_att):
    W = p["word_emb_bf16"]
    D = W.shape[1]
    B, N_rel, _ = ssg_rel.shape
    _, N_obj, N_att = ssg_att.shape

    rel_words = ssg_rel[:, :, 2]
    rel_mask = rel_words == 1                   # (B, N_rel)
    obj_mask = ssg_obj == 1                     # (B, N_obj)
    attr_mask = ssg_att == 1                    # (B, N_obj, N_att)

    rel_emb = W[rel_words]                      # (B, N_rel, D) bf16
    obj_emb = W[ssg_obj]                        # (B, N_obj, D) bf16
    attr_emb = W[ssg_att]                       # (B, N_obj, N_att, D) bf16

    rel_sbj_id = ssg_rel[:, :, 0]
    rel_obj_id = ssg_rel[:, :, 1]
    rel_sbj_feat0 = jnp.take_along_axis(obj_emb, rel_sbj_id[..., None], axis=1)
    rel_obj_feat0 = jnp.take_along_axis(obj_emb, rel_obj_id[..., None], axis=1)

    # ---- fused rel chain (sbj -> obj -> rel) ----
    M_rel = B * N_rel
    keep_rel = jnp.logical_not(rel_mask).astype(jnp.float32).reshape(M_rel, 1)
    rel_sbj_feat, rel_obj_feat, rel_rel_feat = rel_chain(
        rel_sbj_feat0.reshape(M_rel, D), rel_obj_feat0.reshape(M_rel, D),
        rel_emb.reshape(M_rel, D), keep_rel, p["rel_w"], p["rel_b"])
    rel_sbj_feat = rel_sbj_feat.reshape(B, N_rel, D)       # bf16
    rel_obj_feat = rel_obj_feat.reshape(B, N_rel, D)       # bf16
    rel_rel_feat = rel_rel_feat.reshape(B, N_rel, D)       # f32

    # ---- fused obj FC + attr FC (attr summed over attributes in-kernel) ----
    M_obj = B * N_obj
    keep_obj = jnp.logical_not(obj_mask).astype(jnp.float32).reshape(M_obj, 1)
    keep_att = jnp.logical_not(attr_mask).astype(jnp.float32).reshape(M_obj, N_att)
    obj_feat, attr_sum = obj_attr_fused(
        obj_emb.reshape(M_obj, D), keep_obj,
        attr_emb.reshape(M_obj, N_att, D), keep_att,        # pure reshape, no transpose
        p["obj_att_w"], p["obj_b"], p["att_w1"], p["att_b"])
    obj_feat = obj_feat.reshape(B, N_obj, D)
    attr_sum = attr_sum.reshape(B, N_obj, D)

    # ---- scatter_add rewritten as one-hot matmuls (runs on the MXU) ----
    oh = jnp.arange(N_obj)
    onehot_sbj = (rel_sbj_id[..., None] == oh).astype(jnp.bfloat16)   # (B, N_rel, N_obj)
    onehot_obj = (rel_obj_id[..., None] == oh).astype(jnp.bfloat16)
    obj_feat = obj_feat + jnp.einsum('bro,brd->bod', onehot_sbj, rel_sbj_feat,
                                     preferred_element_type=jnp.float32)
    obj_feat = obj_feat + jnp.einsum('bro,brd->bod', onehot_obj, rel_obj_feat,
                                     preferred_element_type=jnp.float32)

    # Reference: counts = ones(B, 2*N_rel, N_obj+1); scatter_(..., 1) on an
    # all-ones tensor is a no-op, so counts.sum(dim=1) == 2*N_rel everywhere.
    rel_object_feat = obj_feat / jnp.float32(2 * N_rel)

    # attribute mean over valid attributes (safe-divide == reference nan+maskfill)
    attr_count = jnp.sum(jnp.logical_not(attr_mask).astype(jnp.int32), axis=-1)
    attr_feat_mean = attr_sum / jnp.maximum(attr_count, 1)[..., None].astype(jnp.float32)
    attr_mask2 = attr_count == 0
    attr_feat_mean = jnp.where(attr_mask2[..., None], 0.0, attr_feat_mean)

    ssg_feat = jnp.concatenate([rel_object_feat, rel_rel_feat, attr_feat_mean], axis=1)
    ssg_mask = jnp.concatenate([obj_mask, rel_mask, attr_mask2], axis=1)[:, None, None, :]
    return ssg_feat, ssg_mask


# ----------------------------------------------------------------------------
# Pure-XLA f32 reference (direct transcription of the PyTorch forward)
# ----------------------------------------------------------------------------
def ssg_forward_reference(params, ssg_rel, ssg_obj, ssg_att):
    W = params["word_emb"]
    B, N_rel, _ = ssg_rel.shape
    _, N_obj, N_att = ssg_att.shape
    rel_mask = ssg_rel[:, :, 2] == 1
    obj_mask = ssg_obj == 1
    attr_mask = ssg_att == 1
    rel_emb = W[ssg_rel[:, :, 2]]
    obj_emb = W[ssg_obj]
    attr_emb = W[ssg_att]
    rel_sbj_id = ssg_rel[:, :, 0]
    rel_obj_id = ssg_rel[:, :, 1]
    sbj0 = jnp.take_along_axis(obj_emb, rel_sbj_id[..., None], axis=1)
    obj0 = jnp.take_along_axis(obj_emb, rel_obj_id[..., None], axis=1)

    def fc(x, w, b):
        return jnp.maximum(x @ w + b, 0.0)

    def mfill(x, m):
        return jnp.where(m[..., None], 0.0, x)

    sbj = mfill(fc(jnp.concatenate([sbj0, obj0, rel_emb], -1),
                   params["rel_sbj_w"], params["rel_sbj_b"]), rel_mask)
    obj = mfill(fc(jnp.concatenate([sbj, obj0, rel_emb], -1),
                   params["rel_obj_w"], params["rel_obj_b"]), rel_mask)
    rel = mfill(fc(jnp.concatenate([sbj, obj, rel_emb], -1),
                   params["rel_rel_w"], params["rel_rel_b"]), rel_mask)
    obj_feat = mfill(fc(obj_emb, params["obj_w"], params["obj_b"]), obj_mask)
    obj_rep = jnp.broadcast_to(obj_emb[:, :, None, :], attr_emb.shape)
    attr_feat = jnp.where(attr_mask[..., None], 0.0,
                          fc(jnp.concatenate([obj_rep, attr_emb], -1),
                             params["att_w"], params["att_b"]))
    oh = jnp.arange(N_obj)
    oh_s = (rel_sbj_id[..., None] == oh).astype(jnp.float32)
    oh_o = (rel_obj_id[..., None] == oh).astype(jnp.float32)
    obj_feat = obj_feat + jnp.einsum('bro,brd->bod', oh_s, sbj)
    obj_feat = obj_feat + jnp.einsum('bro,brd->bod', oh_o, obj)
    rel_object_feat = obj_feat / jnp.float32(2 * N_rel)
    attr_sum = attr_feat.sum(axis=2)
    cnt = jnp.sum(jnp.logical_not(attr_mask).astype(jnp.int32), axis=-1)
    attr_mean = attr_sum / jnp.maximum(cnt, 1)[..., None].astype(jnp.float32)
    amask2 = cnt == 0
    attr_mean = jnp.where(amask2[..., None], 0.0, attr_mean)
    ssg_feat = jnp.concatenate([rel_object_feat, rel, attr_mean], axis=1)
    ssg_mask = jnp.concatenate([obj_mask, rel_mask, amask2], axis=1)[:, None, None, :]
    return ssg_feat, ssg_mask


# ----------------------------------------------------------------------------
# Deterministic parameter init (synthetic — no checkpoint loading)
# ----------------------------------------------------------------------------
def init_params(key, vocab, d_model):
    ks = jax.random.split(key, 11)

    def lin(kw, kb, fin, fout):
        s = 1.0 / jnp.sqrt(jnp.float32(fin))
        w = jax.random.uniform(kw, (fin, fout), jnp.float32, -s, s)
        b = jax.random.uniform(kb, (fout,), jnp.float32, -s, s)
        return w, b

    p = {"word_emb": jax.random.normal(ks[0], (vocab, d_model), jnp.float32) * 0.02}
    p["rel_sbj_w"], p["rel_sbj_b"] = lin(ks[1], ks[2], 3 * d_model, d_model)
    p["rel_obj_w"], p["rel_obj_b"] = lin(ks[3], ks[4], 3 * d_model, d_model)
    p["rel_rel_w"], p["rel_rel_b"] = lin(ks[5], ks[6], 3 * d_model, d_model)
    p["obj_w"],     p["obj_b"]     = lin(ks[7], ks[8], d_model, d_model)
    p["att_w"],     p["att_b"]     = lin(ks[9], ks[10], 2 * d_model, d_model)
    return p


if __name__ == "__main__":
    B, N_obj, N_rel, N_att = 2, 8, 8, 4
    d_model, vocab = 128, 64

    key = jax.random.PRNGKey(0)
    kp, k1, k2, k3, k4 = jax.random.split(key, 5)

    params = init_params(kp, vocab, d_model)
    packed = prepare_params(params)          # one-time bf16 / layout packing

    # ssg_rel[:, :, 0:2] are object indices in [0, N_obj); [:, :, 2] is a word id.
    rel_ids = jax.random.randint(k1, (B, N_rel, 2), 0, N_obj, dtype=jnp.int32)
    rel_words = jax.random.randint(k2, (B, N_rel, 1), 0, vocab, dtype=jnp.int32)
    ssg_rel = jnp.concatenate([rel_ids, rel_words], axis=-1)
    ssg_obj = jax.random.randint(k3, (B, N_obj), 0, vocab, dtype=jnp.int32)
    ssg_att = jax.random.randint(k4, (B, N_obj, N_att), 0, vocab, dtype=jnp.int32)
    # make some entries pad (word id == 1) so all mask paths are exercised
    ssg_rel = ssg_rel.at[:, -2:, 2].set(1)
    ssg_obj = ssg_obj.at[:, -1].set(1)
    ssg_att = ssg_att.at[:, :, -1].set(1)
    ssg_att = ssg_att.at[:, 0, :].set(1)     # one object with zero valid attributes

    fwd = jax.jit(ssg_forward)
    ssg_feat, ssg_mask = fwd(packed, ssg_rel, ssg_obj, ssg_att)
    jax.block_until_ready((ssg_feat, ssg_mask))

    assert ssg_feat.shape == (B, N_obj + N_rel + N_obj, d_model), ssg_feat.shape
    assert ssg_mask.shape == (B, 1, 1, N_obj + N_rel + N_obj), ssg_mask.shape
    assert bool(jnp.all(jnp.isfinite(ssg_feat)))

    # correctness check vs the f32 XLA reference (bf16 MXU path -> loose atol)
    ref_feat, ref_mask = jax.jit(ssg_forward_reference)(params, ssg_rel, ssg_obj, ssg_att)
    max_err = float(jnp.max(jnp.abs(ssg_feat - ref_feat)))
    assert max_err < 5e-3, f"max abs error vs reference: {max_err}"
    assert bool(jnp.all(ssg_mask == ref_mask))

    print("KERNEL_OK")
</pallas_src>

<mosaic_0001>
module attributes {stable_mosaic.version = 11 : i64} {
  func.func @_obj_attr_kernel(%arg0: i32, %arg1: memref<16x128xbf16, #tpu.memory_space<vmem>>, %arg2: memref<16x1xf32, #tpu.memory_space<vmem>>, %arg3: memref<16x4x128xbf16, #tpu.memory_space<vmem>>, %arg4: memref<16x4xf32, #tpu.memory_space<vmem>>, %arg5: memref<128x256xbf16, #tpu.memory_space<vmem>>, %arg6: memref<1x128xf32, #tpu.memory_space<vmem>>, %arg7: memref<128x128xbf16, #tpu.memory_space<vmem>>, %arg8: memref<1x128xf32, #tpu.memory_space<vmem>>, %arg9: memref<16x128xf32, #tpu.memory_space<vmem>>, %arg10: memref<16x128xf32, #tpu.memory_space<vmem>>) attributes {dimension_semantics = [#tpu.dimension_semantics<parallel>], iteration_bounds = array<i64: 2>, scalar_prefetch = 0 : i64, scratch_operands = 0 : i64, tpu.core_type = #tpu.core_type<tc>, window_params = [{transform_indices = @transform_0, window_bounds = array<i64: 16, 128>}, {transform_indices = @transform_1, window_bounds = array<i64: 16, 1>}, {transform_indices = @transform_2, window_bounds = array<i64: 16, 4, 128>}, {transform_indices = @transform_3, window_bounds = array<i64: 16, 4>}, {pipeline_mode = #tpu.pipeline_mode<synchronous>, transform_indices = @transform_4, window_bounds = array<i64: 128, 256>}, {pipeline_mode = #tpu.pipeline_mode<synchronous>, transform_indices = @transform_5, window_bounds = array<i64: 1, 128>}, {pipeline_mode = #tpu.pipeline_mode<synchronous>, transform_indices = @transform_6, window_bounds = array<i64: 128, 128>}, {pipeline_mode = #tpu.pipeline_mode<synchronous>, transform_indices = @transform_7, window_bounds = array<i64: 1, 128>}, {transform_indices = @transform_8, window_bounds = array<i64: 16, 128>}, {transform_indices = @transform_9, window_bounds = array<i64: 16, 128>}]} {
    %c0 = arith.constant 0 : index
    %c0_0 = arith.constant 0 : index
    %0 = vector.load %arg1[%c0, %c0_0] : memref<16x128xbf16, #tpu.memory_space<vmem>>, vector<16x128xbf16>
    %c0_1 = arith.constant 0 : index
    %c0_2 = arith.constant 0 : index
    %1 = vector.load %arg5[%c0_1, %c0_2] : memref<128x256xbf16, #tpu.memory_space<vmem>>, vector<128x256xbf16>
    %cst = arith.constant dense<0.000000e+00> : vector<16x256xf32>
    %2 = tpu.matmul %0, %1, %cst {dimension_numbers = #tpu.dot_dimension_numbers<[1], [0], [0], [1], [0, 0, 1, 1], [], []>} : vector<16x128xbf16>, vector<128x256xbf16>, vector<16x256xf32> -> vector<16x256xf32>
    %3 = vector.extract_strided_slice %2 {offsets = [0, 0], sizes = [16, 128], strides = [1, 1]} : vector<16x256xf32> to vector<16x128xf32>
    %c0_3 = arith.constant 0 : index
    %c0_4 = arith.constant 0 : index
    %4 = vector.load %arg6[%c0_3, %c0_4] : memref<1x128xf32, #tpu.memory_space<vmem>>, vector<1x128xf32>
    %5 = vector.broadcast %4 : vector<1x128xf32> to vector<16x128xf32>
    %6 = arith.addf %3, %5 : vector<16x128xf32>
    %cst_5 = arith.constant 0.000000e+00 : f32
    %7 = vector.broadcast %cst_5 : f32 to vector<16x128xf32>
    %8 = arith.maximumf %6, %7 : vector<16x128xf32>
    %c0_6 = arith.constant 0 : index
    %c0_7 = arith.constant 0 : index
    %9 = vector.load %arg2[%c0_6, %c0_7] : memref<16x1xf32, #tpu.memory_space<vmem>>, vector<16x1xf32>
    %10 = vector.broadcast %9 : vector<16x1xf32> to vector<16x128xf32>
    %11 = arith.mulf %8, %10 : vector<16x128xf32>
    %c0_8 = arith.constant 0 : index
    %c0_9 = arith.constant 0 : index
    %12 = vector.load %arg9[%c0_8, %c0_9] : memref<16x128xf32, #tpu.memory_space<vmem>>, vector<16x128xf32>
    tpu.vector_store %arg9[%c0_8, %c0_9], %11 {strides = array<i32>} : memref<16x128xf32, #tpu.memory_space<vmem>>, vector<16x128xf32>,
    %13 = vector.extract_strided_slice %2 {offsets = [0, 128], sizes = [16, 128], strides = [1, 1]} : vector<16x256xf32> to vector<16x128xf32>
    %c0_10 = arith.constant 0 : index
    %c0_11 = arith.constant 0 : index
    %14 = vector.load %arg7[%c0_10, %c0_11] : memref<128x128xbf16, #tpu.memory_space<vmem>>, vector<128x128xbf16>
    %c0_12 = arith.constant 0 : index
    %c0_13 = arith.constant 0 : index
    %15 = vector.load %arg8[%c0_12, %c0_13] : memref<1x128xf32, #tpu.memory_space<vmem>>, vector<1x128xf32>
    %c0_14 = arith.constant 0 : index
    %c0_15 = arith.constant 0 : index
    %16 = vector.load %arg4[%c0_14, %c0_15] : memref<16x4xf32, #tpu.memory_space<vmem>>, vector<16x4xf32>
    %cst_16 = arith.constant 0.000000e+00 : f32
    %17 = vector.broadcast %cst_16 : f32 to vector<16x128xf32>
    %c0_17 = arith.constant 0 : index
    %c0_18 = arith.constant 0 : index
    %c0_19 = arith.constant 0 : index
    %18 = vector.load %arg3[%c0_17, %c0_18, %c0_19] : memref<16x4x128xbf16, #tpu.memory_space<vmem>>, vector<16x1x128xbf16>
    %19 = vector.shape_cast %18 : vector<16x1x128xbf16> to vector<16x128xbf16>
    %cst_20 = arith.constant dense<0.000000e+00> : vector<16x128xf32>
    %20 = tpu.matmul %19, %14, %cst_20 {dimension_numbers = #tpu.dot_dimension_numbers<[1], [0], [0], [1], [0, 0, 1, 1], [], []>} : vector<16x128xbf16>, vector<128x128xbf16>, vector<16x128xf32> -> vector<16x128xf32>
    %21 = arith.addf %13, %20 : vector<16x128xf32>
    %22 = vector.broadcast %15 : vector<1x128xf32> to vector<16x128xf32>
    %23 = arith.addf %21, %22 : vector<16x128xf32>
    %cst_21 = arith.constant 0.000000e+00 : f32
    %24 = vector.broadcast %cst_21 : f32 to vector<16x128xf32>
    %25 = arith.maximumf %23, %24 : vector<16x128xf32>
    %26 = vector.extract_strided_slice %16 {offsets = [0, 0], sizes = [16, 1], strides = [1, 1]} : vector<16x4xf32> to vector<16x1xf32>
    %27 = vector.broadcast %26 : vector<16x1xf32> to vector<16x128xf32>
    %28 = arith.mulf %25, %27 : vector<16x128xf32>
    %29 = arith.addf %17, %28 : vector<16x128xf32>
    %c0_22 = arith.constant 0 : index
    %c1 = arith.constant 1 : index
    %c0_23 = arith.constant 0 : index
    %30 = vector.load %arg3[%c0_22, %c1, %c0_23] : memref<16x4x128xbf16, #tpu.memory_space<vmem>>, vector<16x1x128xbf16>
    %31 = vector.shape_cast %30 : vector<16x1x128xbf16> to vector<16x128xbf16>
    %cst_24 = arith.constant dense<0.000000e+00> : vector<16x128xf32>
    %32 = tpu.matmul %31, %14, %cst_24 {dimension_numbers = #tpu.dot_dimension_numbers<[1], [0], [0], [1], [0, 0, 1, 1], [], []>} : vector<16x128xbf16>, vector<128x128xbf16>, vector<16x128xf32> -> vector<16x128xf32>
    %33 = arith.addf %13, %32 : vector<16x128xf32>
    %34 = vector.broadcast %15 : vector<1x128xf32> to vector<16x128xf32>
    %35 = arith.addf %33, %34 : vector<16x128xf32>
    %cst_25 = arith.constant 0.000000e+00 : f32
    %36 = vector.broadcast %cst_25 : f32 to vector<16x128xf32>
    %37 = arith.maximumf %35, %36 : vector<16x128xf32>
    %38 = vector.extract_strided_slice %16 {offsets = [0, 1], sizes = [16, 1], strides = [1, 1]} : vector<16x4xf32> to vector<16x1xf32>
    %39 = vector.broadcast %38 : vector<16x1xf32> to vector<16x128xf32>
    %40 = arith.mulf %37, %39 : vector<16x128xf32>
    %41 = arith.addf %29, %40 : vector<16x128xf32>
    %c0_26 = arith.constant 0 : index
    %c2 = arith.constant 2 : index
    %c0_27 = arith.constant 0 : index
    %42 = vector.load %arg3[%c0_26, %c2, %c0_27] : memref<16x4x128xbf16, #tpu.memory_space<vmem>>, vector<16x1x128xbf16>
    %43 = vector.shape_cast %42 : vector<16x1x128xbf16> to vector<16x128xbf16>
    %cst_28 = arith.constant dense<0.000000e+00> : vector<16x128xf32>
    %44 = tpu.matmul %43, %14, %cst_28 {dimension_numbers = #tpu.dot_dimension_numbers<[1], [0], [0], [1], [0, 0, 1, 1], [], []>} : vector<16x128xbf16>, vector<128x128xbf16>, vector<16x128xf32> -> vector<16x128xf32>
    %45 = arith.addf %13, %44 : vector<16x128xf32>
    %46 = vector.broadcast %15 : vector<1x128xf32> to vector<16x128xf32>
    %47 = arith.addf %45, %46 : vector<16x128xf32>
    %cst_29 = arith.constant 0.000000e+00 : f32
    %48 = vector.broadcast %cst_29 : f32 to vector<16x128xf32>
    %49 = arith.maximumf %47, %48 : vector<16x128xf32>
    %50 = vector.extract_strided_slice %16 {offsets = [0, 2], sizes = [16, 1], strides = [1, 1]} : vector<16x4xf32> to vector<16x1xf32>
    %51 = vector.broadcast %50 : vector<16x1xf32> to vector<16x128xf32>
    %52 = arith.mulf %49, %51 : vector<16x128xf32>
    %53 = arith.addf %41, %52 : vector<16x128xf32>
    %c0_30 = arith.constant 0 : index
    %c3 = arith.constant 3 : index
    %c0_31 = arith.constant 0 : index
    %54 = vector.load %arg3[%c0_30, %c3, %c0_31] : memref<16x4x128xbf16, #tpu.memory_space<vmem>>, vector<16x1x128xbf16>
    %55 = vector.shape_cast %54 : vector<16x1x128xbf16> to vector<16x128xbf16>
    %cst_32 = arith.constant dense<0.000000e+00> : vector<16x128xf32>
    %56 = tpu.matmul %55, %14, %cst_32 {dimension_numbers = #tpu.dot_dimension_numbers<[1], [0], [0], [1], [0, 0, 1, 1], [], []>} : vector<16x128xbf16>, vector<128x128xbf16>, vector<16x128xf32> -> vector<16x128xf32>
    %57 = arith.addf %13, %56 : vector<16x128xf32>
    %58 = vector.broadcast %15 : vector<1x128xf32> to vector<16x128xf32>
    %59 = arith.addf %57, %58 : vector<16x128xf32>
    %cst_33 = arith.constant 0.000000e+00 : f32
    %60 = vector.broadcast %cst_33 : f32 to vector<16x128xf32>
    %61 = arith.maximumf %59, %60 : vector<16x128xf32>
    %62 = vector.extract_strided_slice %16 {offsets = [0, 3], sizes = [16, 1], strides = [1, 1]} : vector<16x4xf32> to vector<16x1xf32>
    %63 = vector.broadcast %62 : vector<16x1xf32> to vector<16x128xf32>
    %64 = arith.mulf %61, %63 : vector<16x128xf32>
    %65 = arith.addf %53, %64 : vector<16x128xf32>
    %c0_34 = arith.constant 0 : index
    %c0_35 = arith.constant 0 : index
    %66 = vector.load %arg10[%c0_34, %c0_35] : memref<16x128xf32, #tpu.memory_space<vmem>>, vector<16x128xf32>
    tpu.vector_store %arg10[%c0_34, %c0_35], %65 {strides = array<i32>} : memref<16x128xf32, #tpu.memory_space<vmem>>, vector<16x128xf32>,
    return
  }
  func.func @transform_0(%arg0: i32) -> (i32, i32) {
    %c0_i32 = arith.constant 0 : i32
    %c0_i32_0 = arith.constant 0 : i32
    return %arg0, %c0_i32 : i32, i32
  }
  func.func @transform_1(%arg0: i32) -> (i32, i32) {
    %c0_i32 = arith.constant 0 : i32
    %c0_i32_0 = arith.constant 0 : i32
    return %arg0, %c0_i32 : i32, i32
  }
  func.func @transform_2(%arg0: i32) -> (i32, i32, i32) {
    %c0_i32 = arith.constant 0 : i32
    %c0_i32_0 = arith.constant 0 : i32
    %c0_i32_1 = arith.constant 0 : i32
    return %arg0, %c0_i32, %c0_i32_0 : i32, i32, i32
  }
  func.func @transform_3(%arg0: i32) -> (i32, i32) {
    %c0_i32 = arith.constant 0 : i32
    %c0_i32_0 = arith.constant 0 : i32
    return %arg0, %c0_i32 : i32, i32
  }
  func.func @transform_4(%arg0: i32) -> (i32, i32) {
    %c0_i32 = arith.constant 0 : i32
    %c0_i32_0 = arith.constant 0 : i32
    %c0_i32_1 = arith.constant 0 : i32
    return %c0_i32, %c0_i32_0 : i32, i32
  }
  func.func @transform_5(%arg0: i32) -> (i32, i32) {
    %c0_i32 = arith.constant 0 : i32
    %c0_i32_0 = arith.constant 0 : i32
    %c0_i32_1 = arith.constant 0 : i32
    return %c0_i32, %c0_i32_0 : i32, i32
  }
  func.func @transform_6(%arg0: i32) -> (i32, i32) {
    %c0_i32 = arith.constant 0 : i32
    %c0_i32_0 = arith.constant 0 : i32
    %c0_i32_1 = arith.constant 0 : i32
    return %c0_i32, %c0_i32_0 : i32, i32
  }
  func.func @transform_7(%arg0: i32) -> (i32, i32) {
    %c0_i32 = arith.constant 0 : i32
    %c0_i32_0 = arith.constant 0 : i32
    %c0_i32_1 = arith.constant 0 : i32
    return %c0_i32, %c0_i32_0 : i32, i32
  }
  func.func @transform_8(%arg0: i32) -> (i32, i32) {
    %c0_i32 = arith.constant 0 : i32
    %c0_i32_0 = arith.constant 0 : i32
    return %arg0, %c0_i32 : i32, i32
  }
  func.func @transform_9(%arg0: i32) -> (i32, i32) {
    %c0_i32 = arith.constant 0 : i32
    %c0_i32_0 = arith.constant 0 : i32
    return %arg0, %c0_i32 : i32, i32
  }
}

module attributes {stable_mosaic.version = 11 : i64} {
  func.func @_rel_chain_kernel(%arg0: i32, %arg1: memref<16x128xbf16, #tpu.memory_space<vmem>>, %arg2: memref<16x128xbf16, #tpu.memory_space<vmem>>, %arg3: memref<16x128xbf16, #tpu.memory_space<vmem>>, %arg4: memref<16x1xf32, #tpu.memory_space<vmem>>, %arg5: memref<3x384x128xbf16, #tpu.memory_space<vmem>>, %arg6: memref<3x1x128xf32, #tpu.memory_space<vmem>>, %arg7: memref<16x128xbf16, #tpu.memory_space<vmem>>, %arg8: memref<16x128xbf16, #tpu.memory_space<vmem>>, %arg9: memref<16x128xf32, #tpu.memory_space<vmem>>) attributes {dimension_semantics = [#tpu.dimension_semantics<parallel>], iteration_bounds = array<i64: 2>, scalar_prefetch = 0 : i64, scratch_operands = 0 : i64, tpu.core_type = #tpu.core_type<tc>, window_params = [{transform_indices = @transform_0, window_bounds = array<i64: 16, 128>}, {transform_indices = @transform_1, window_bounds = array<i64: 16, 128>}, {transform_indices = @transform_2, window_bounds = array<i64: 16, 128>}, {transform_indices = @transform_3, window_bounds = array<i64: 16, 1>}, {pipeline_mode = #tpu.pipeline_mode<synchronous>, transform_indices = @transform_4, window_bounds = array<i64: 3, 384, 128>}, {pipeline_mode = #tpu.pipeline_mode<synchronous>, transform_indices = @transform_5, window_bounds = array<i64: 3, 1, 128>}, {transform_indices = @transform_6, window_bounds = array<i64: 16, 128>}, {transform_indices = @transform_7, window_bounds = array<i64: 16, 128>}, {transform_indices = @transform_8, window_bounds = array<i64: 16, 128>}]} {
    %c0 = arith.constant 0 : index
    %c0_0 = arith.constant 0 : index
    %0 = vector.load %arg4[%c0, %c0_0] : memref<16x1xf32, #tpu.memory_space<vmem>>, vector<16x1xf32>
    %c0_1 = arith.constant 0 : index
    %c0_2 = arith.constant 0 : index
    %1 = vector.load %arg2[%c0_1, %c0_2] : memref<16x128xbf16, #tpu.memory_space<vmem>>, vector<16x128xbf16>
    %c0_3 = arith.constant 0 : index
    %c0_4 = arith.constant 0 : index
    %2 = vector.load %arg3[%c0_3, %c0_4] : memref<16x128xbf16, #tpu.memory_space<vmem>>, vector<16x128xbf16>
    %c0_5 = arith.constant 0 : index
    %c0_6 = arith.constant 0 : index
    %3 = vector.load %arg1[%c0_5, %c0_6] : memref<16x128xbf16, #tpu.memory_space<vmem>>, vector<16x128xbf16>
    %4 = tpu.concatenate %3, %1, %2 in 1 : vector<16x128xbf16>, vector<16x128xbf16>, vector<16x128xbf16> -> vector<16x384xbf16>
    %c0_7 = arith.constant 0 : index
    %c0_8 = arith.constant 0 : index
    %c0_9 = arith.constant 0 : index
    %5 = vector.load %arg5[%c0_7, %c0_8, %c0_9] : memref<3x384x128xbf16, #tpu.memory_space<vmem>>, vector<1x384x128xbf16>
    %6 = vector.shape_cast %5 : vector<1x384x128xbf16> to vector<384x128xbf16>
    %cst = arith.constant dense<0.000000e+00> : vector<16x128xf32>
    %7 = tpu.matmul %4, %6, %cst {dimension_numbers = #tpu.dot_dimension_numbers<[1], [0], [0], [1], [0, 0, 1, 1], [], []>} : vector<16x384xbf16>, vector<384x128xbf16>, vector<16x128xf32> -> vector<16x128xf32>
    %c0_10 = arith.constant 0 : index
    %c0_11 = arith.constant 0 : index
    %c0_12 = arith.constant 0 : index
    %8 = vector.load %arg6[%c0_10, %c0_11, %c0_12] : memref<3x1x128xf32, #tpu.memory_space<vmem>>, vector<1x1x128xf32>
    %9 = vector.shape_cast %8 : vector<1x1x128xf32> to vector<1x128xf32>
    %10 = vector.broadcast %9 : vector<1x128xf32> to vector<16x128xf32>
    %11 = arith.addf %7, %10 : vector<16x128xf32>
    %cst_13 = arith.constant 0.000000e+00 : f32
    %12 = vector.broadcast %cst_13 : f32 to vector<16x128xf32>
    %13 = arith.maximumf %11, %12 : vector<16x128xf32>
    %14 = vector.broadcast %0 : vector<16x1xf32> to vector<16x128xf32>
    %15 = arith.mulf %13, %14 : vector<16x128xf32>
    %16 = arith.truncf %15 : vector<16x128xf32> to vector<16x128xbf16>
    %17 = tpu.concatenate %16, %1, %2 in 1 : vector<16x128xbf16>, vector<16x128xbf16>, vector<16x128xbf16> -> vector<16x384xbf16>
    %c1 = arith.constant 1 : index
    %c0_14 = arith.constant 0 : index
    %c0_15 = arith.constant 0 : index
    %18 = vector.load %arg5[%c1, %c0_14, %c0_15] : memref<3x384x128xbf16, #tpu.memory_space<vmem>>, vector<1x384x128xbf16>
    %19 = vector.shape_cast %18 : vector<1x384x128xbf16> to vector<384x128xbf16>
    %cst_16 = arith.constant dense<0.000000e+00> : vector<16x128xf32>
    %20 = tpu.matmul %17, %19, %cst_16 {dimension_numbers = #tpu.dot_dimension_numbers<[1], [0], [0], [1], [0, 0, 1, 1], [], []>} : vector<16x384xbf16>, vector<384x128xbf16>, vector<16x128xf32> -> vector<16x128xf32>
    %c1_17 = arith.constant 1 : index
    %c0_18 = arith.constant 0 : index
    %c0_19 = arith.constant 0 : index
    %21 = vector.load %arg6[%c1_17, %c0_18, %c0_19] : memref<3x1x128xf32, #tpu.memory_space<vmem>>, vector<1x1x128xf32>
    %22 = vector.shape_cast %21 : vector<1x1x128xf32> to vector<1x128xf32>
    %23 = vector.broadcast %22 : vector<1x128xf32> to vector<16x128xf32>
    %24 = arith.addf %20, %23 : vector<16x128xf32>
    %cst_20 = arith.constant 0.000000e+00 : f32
    %25 = vector.broadcast %cst_20 : f32 to vector<16x128xf32>
    %26 = arith.maximumf %24, %25 : vector<16x128xf32>
    %27 = vector.broadcast %0 : vector<16x1xf32> to vector<16x128xf32>
    %28 = arith.mulf %26, %27 : vector<16x128xf32>
    %29 = arith.truncf %28 : vector<16x128xf32> to vector<16x128xbf16>
    %30 = tpu.concatenate %16, %29, %2 in 1 : vector<16x128xbf16>, vector<16x128xbf16>, vector<16x128xbf16> -> vector<16x384xbf16>
    %c2 = arith.constant 2 : index
    %c0_21 = arith.constant 0 : index
    %c0_22 = arith.constant 0 : index
    %31 = vector.load %arg5[%c2, %c0_21, %c0_22] : memref<3x384x128xbf16, #tpu.memory_space<vmem>>, vector<1x384x128xbf16>
    %32 = vector.shape_cast %31 : vector<1x384x128xbf16> to vector<384x128xbf16>
    %cst_23 = arith.constant dense<0.000000e+00> : vector<16x128xf32>
    %33 = tpu.matmul %30, %32, %cst_23 {dimension_numbers = #tpu.dot_dimension_numbers<[1], [0], [0], [1], [0, 0, 1, 1], [], []>} : vector<16x384xbf16>, vector<384x128xbf16>, vector<16x128xf32> -> vector<16x128xf32>
    %c2_24 = arith.constant 2 : index
    %c0_25 = arith.constant 0 : index
    %c0_26 = arith.constant 0 : index
    %34 = vector.load %arg6[%c2_24, %c0_25, %c0_26] : memref<3x1x128xf32, #tpu.memory_space<vmem>>, vector<1x1x128xf32>
    %35 = vector.shape_cast %34 : vector<1x1x128xf32> to vector<1x128xf32>
    %36 = vector.broadcast %35 : vector<1x128xf32> to vector<16x128xf32>
    %37 = arith.addf %33, %36 : vector<16x128xf32>
    %cst_27 = arith.constant 0.000000e+00 : f32
    %38 = vector.broadcast %cst_27 : f32 to vector<16x128xf32>
    %39 = arith.maximumf %37, %38 : vector<16x128xf32>
    %40 = vector.broadcast %0 : vector<16x1xf32> to vector<16x128xf32>
    %41 = arith.mulf %39, %40 : vector<16x128xf32>
    %c0_28 = arith.constant 0 : index
    %c0_29 = arith.constant 0 : index
    %42 = vector.load %arg7[%c0_28, %c0_29] : memref<16x128xbf16, #tpu.memory_space<vmem>>, vector<16x128xbf16>
    tpu.vector_store %arg7[%c0_28, %c0_29], %16 {strides = array<i32>} : memref<16x128xbf16, #tpu.memory_space<vmem>>, vector<16x128xbf16>,
    %c0_30 = arith.constant 0 : index
    %c0_31 = arith.constant 0 : index
    %43 = vector.load %arg8[%c0_30, %c0_31] : memref<16x128xbf16, #tpu.memory_space<vmem>>, vector<16x128xbf16>
    tpu.vector_store %arg8[%c0_30, %c0_31], %29 {strides = array<i32>} : memref<16x128xbf16, #tpu.memory_space<vmem>>, vector<16x128xbf16>,
    %c0_32 = arith.constant 0 : index
    %c0_33 = arith.constant 0 : index
    %44 = vector.load %arg9[%c0_32, %c0_33] : memref<16x128xf32, #tpu.memory_space<vmem>>, vector<16x128xf32>
    tpu.vector_store %arg9[%c0_32, %c0_33], %41 {strides = array<i32>} : memref<16x128xf32, #tpu.memory_space<vmem>>, vector<16x128xf32>,
    return
  }
  func.func @transform_0(%arg0: i32) -> (i32, i32) {
    %c0_i32 = arith.constant 0 : i32
    %c0_i32_0 = arith.constant 0 : i32
    return %arg0, %c0_i32 : i32, i32
  }
  func.func @transform_1(%arg0: i32) -> (i32, i32) {
    %c0_i32 = arith.constant 0 : i32
    %c0_i32_0 = arith.constant 0 : i32
    return %arg0, %c0_i32 : i32, i32
  }
  func.func @transform_2(%arg0: i32) -> (i32, i32) {
    %c0_i32 = arith.constant 0 : i32
    %c0_i32_0 = arith.constant 0 : i32
    return %arg0, %c0_i32 : i32, i32
  }
  func.func @transform_3(%arg0: i32) -> (i32, i32) {
    %c0_i32 = arith.constant 0 : i32
    %c0_i32_0 = arith.constant 0 : i32
    return %arg0, %c0_i32 : i32, i32
  }
  func.func @transform_4(%arg0: i32) -> (i32, i32, i32) {
    %c0_i32 = arith.constant 0 : i32
    %c0_i32_0 = arith.constant 0 : i32
    %c0_i32_1 = arith.constant 0 : i32
    %c0_i32_2 = arith.constant 0 : i32
    return %c0_i32, %c0_i32_0, %c0_i32_1 : i32, i32, i32
  }
  func.func @transform_5(%arg0: i32) -> (i32, i32, i32) {
    %c0_i32 = arith.constant 0 : i32
    %c0_i32_0 = arith.constant 0 : i32
    %c0_i32_1 = arith.constant 0 : i32
    %c0_i32_2 = arith.constant 0 : i32
    return %c0_i32, %c0_i32_0, %c0_i32_1 : i32, i32, i32
  }
  func.func @transform_6(%arg0: i32) -> (i32, i32) {
    %c0_i32 = arith.constant 0 : i32
    %c0_i32_0 = arith.constant 0 : i32
    return %arg0, %c0_i32 : i32, i32
  }
  func.func @transform_7(%arg0: i32) -> (i32, i32) {
    %c0_i32 = arith.constant 0 : i32
    %c0_i32_0 = arith.constant 0 : i32
    return %arg0, %c0_i32 : i32, i32
  }
  func.func @transform_8(%arg0: i32) -> (i32, i32) {
    %c0_i32 = arith.constant 0 : i32
    %c0_i32_0 = arith.constant 0 : i32
    return %arg0, %c0_i32 : i32, i32
  }
}

</mosaic_0001>

<bundles_post_ra>
// kernel: ssg_forward.2
= control target key start
LH: loop header
LB: loop body
LE: loop exit
PB: predicated region body
PF: predicated region fallthrough
CT: control target
= control target key end

     0   :  { %s1921_s27 = smov 0   ;;  %s2212_s0 = inlined_call_operand.vmem [shape: bf16[32,128], index: 0, kind: input, shape index: {}]   ;;  %s2213_s1 = inlined_call_operand.vmem [shape: bf16[32,128], index: 1, kind: input, shape index: {}]   ;;  %s2214_s2 = inlined_call_operand.vmem [shape: bf16[32,128], index: 2, kind: input, shape index: {}]   ;;  %s2215_s3 = inlined_call_operand.vmem [shape: f32[32,1], index: 3, kind: input, shape index: {}]   ;;  %s2216_s4 = inlined_call_operand.vmem [shape: bf16[3,384,128], index: 4, kind: input, shape index: {}]   ;;  %s2217_s5 = inlined_call_operand.vmem [shape: f32[3,1,128], index: 5, kind: input, shape index: {}]   ;;  %s2218_s6 = inlined_call_operand.vmem [shape: bf16[32,128], index: 6, kind: output, shape index: {0}]   ;;  %s2219_s7 = inlined_call_operand.vmem [shape: bf16[32,128], index: 7, kind: output, shape index: {1}]   ;;  %s2220_s8 = inlined_call_operand.vmem [shape: f32[32,128], index: 8, kind: output, shape index: {2}]  }
   0x1 LB: > { %s1350_s28 = sadd.s32 4294967295, %s1873_s27   ;;  %p1354_p0 = scmp.ge.s32.totalorder %s1873_s27, 1  ;;  %s1873_s27 = sphi %s1921_s27, %s19_s27  }
   0x2   : > { %p301_p1 = scmp.lt.s32.totalorder %s1873_s27, 3 }
   0x4   : > { %p302_p2 = pnand %p1354_p0, %p301_p1 }
   0x5   : > { %s1355_s13 = sshll.u32 (!%p302_p2), %s1350_s28, 1 }
   0x6   : > { %305 = sbr.rel (%p302_p2) target bundleno = 502 (0x1f6), region = 44  ;;  %p361_p3 = scmp.lt.s32.totalorder (!%p302_p2), %s1355_s13, 3 }
   0xb   : > { %v1779_v0 = vld [vmem:[%s2216_s4 + $0x38] sm:$0xff]  ;;  %v1778_v3 = vld [vmem:[%s2216_s4 + $0x30] sm:$0xff]  ;;  %s2222_s13 = smov (!%p361_p3, %s1355_s13), 3  ;;  %v1875_v6 = vmov 0   ;;  %v1777_v7 = vld [vmem:[%s2216_s4 + $0x28] sm:$0xff] }
   0xc   : > { %v1787_v1 = vld [vmem:[%s2216_s4 + $0x78] sm:$0xff]  ;;  %624 = vmatpush.bf16.msra.mxu0 %v1779_v0  ;;  %v1786_v4 = vld [vmem:[%s2216_s4 + $0x70] sm:$0xff]  ;;  %1863 = vset.pattern.permute.xlu0 %v1875_v6  ;;  %s1362_s20 = sshll.u32 %s2222_s13, 3  ;;  %v1785_v8 = vld [vmem:[%s2216_s4 + $0x68] sm:$0xff]  ;;  %s2004_s17 = sshll.u32 %s2222_s13, 2 }
   0xd   : > { %v1795_v2 = vld [vmem:[%s2216_s4 + $0xb8] sm:$0xff]  ;;  %638 = vmatpush.bf16.msra.mxu1 %v1787_v1  ;;  %v1794_v5 = vld [vmem:[%s2216_s4 + $0xb0] sm:$0xff]  ;;  %v1793_v9 = vld [vmem:[%s2216_s4 + $0xa8] sm:$0xff]  ;;  %s382_s30 = scalar_lea.vmem %s2215_s3, %s1362_s20  ;;  %s364_s25 = scalar_lea.vmem %s2212_s0, %s2004_s17 }
   0xe   : > { %652 = vmatpush.bf16.msra.mxu2 %v1795_v2  ;;  %v402_v10 = vld [vmem:[%s382_s30] sm:$0xff]  ;;  %v1803_v11 = vld [vmem:[%s2216_s4 + $0xf8] sm:$0xff]  ;;  %v403_v18 = vld [vmem:[%s382_s30 + $0x8] sm:$0xff]  ;;  %s370_s29 = scalar_lea.vmem %s2213_s1, %s2004_s17  ;;  %s376_s12 = scalar_lea.vmem %s2214_s2, %s2004_s17 }
   0xf   : > { %v1776_v12 = vld [vmem:[%s2216_s4 + $0x20] sm:$0xff]  ;;  %670 = vperm.xlu0 %1863, %v402_v10   ;;  %886 = vmatpush.bf16.msra.mxu3 %v1803_v11  ;;  %v1775_v15 = vld [vmem:[%s2216_s4 + $0x18] sm:$0xff]  ;;  %v1774_v19 = vld [vmem:[%s2216_s4 + $0x10] sm:$0xff]  ;;  %s394_s9 = scalar_lea.vmem %s2219_s7, %s2004_s17 }
  0x10   : > { %625 = vmatpush.bf16.msra.mxu0 %v1778_v3  ;;  %v1784_v13 = vld [vmem:[%s2216_s4 + $0x60] sm:$0xff]  ;;  %v1783_v16 = vld [vmem:[%s2216_s4 + $0x58] sm:$0xff]  ;;  %v1782_v20 = vld [vmem:[%s2216_s4 + $0x50] sm:$0xff] }
  0x11   : > { %639 = vmatpush.bf16.msra.mxu1 %v1786_v4  ;;  %v1792_v14 = vld [vmem:[%s2216_s4 + $0xa0] sm:$0xff]  ;;  %v1791_v17 = vld [vmem:[%s2216_s4 + $0x98] sm:$0xff]  ;;  %v1790_v21 = vld [vmem:[%s2216_s4 + $0x90] sm:$0xff] }
  0x12   : > { %653 = vmatpush.bf16.msra.mxu2 %v1794_v5  ;;  %v1773_v22 = vld [vmem:[%s2216_s4 + $0x8] sm:$0xff]  ;;  %v1772_v25 = vld [vmem:[%s2216_s4] sm:$0xff]  ;;  %v1811_v28 = vld [vmem:[%s2216_s4 + $0x138] sm:$0xff] }
  0x13   : > { %v1781_v23 = vld [vmem:[%s2216_s4 + $0x48] sm:$0xff]  ;;  %v1780_v26 = vld [vmem:[%s2216_s4 + $0x40] sm:$0xff]  ;;  %v1827_v29 = vld [vmem:[%s2216_s4 + $0x1b8] sm:$0xff] }
  0x14   : > { %626 = vmatpush.bf16.msra.mxu0 %v1777_v7  ;;  %v1789_v24 = vld [vmem:[%s2216_s4 + $0x88] sm:$0xff]  ;;  %v1788_v27 = vld [vmem:[%s2216_s4 + $0x80] sm:$0xff]  ;;  %v1819_v30 = vld [vmem:[%s2216_s4 + $0x178] sm:$0xff] }
  0x15   : > { %640 = vmatpush.bf16.msra.mxu1 %v1785_v8  ;;  %v1771_v31 = vld [vmem:[%s364_s25] sm:$0xff]  ;;  %v1802_v34 = vld [vmem:[%s2216_s4 + $0xf0] sm:$0xff]  ;;  %v1801_v38 = vld [vmem:[%s2216_s4 + $0xe8] sm:$0xff] }
  0x16   : > { %654 = vmatpush.bf16.msra.mxu2 %v1793_v9  ;;  %v2036_v32 = vld [vmem:[%s370_s29] sm:$0xff]  ;;  %v1810_v35 = vld [vmem:[%s2216_s4 + $0x130] sm:$0xff]  ;;  %887 = vmatpush.bf16.msra.mxu3 %v1802_v34  ;;  %v1809_v39 = vld [vmem:[%s2216_s4 + $0x128] sm:$0xff]  ;;  %s388_s29 = scalar_lea.vmem %s2218_s6, %s2004_s17 }
  0x17   : > { %675 = vperm.xlu0 %1863, %v403_v18   ;;  %v2038_v33 = vld [vmem:[%s376_s12] sm:$0xff]  ;;  %v1826_v36 = vld [vmem:[%s2216_s4 + $0x1b0] sm:$0xff]  ;;  %v1825_v40 = vld [vmem:[%s2216_s4 + $0x1a8] sm:$0xff]  ;;  %s400_s12 = scalar_lea.vmem %s2220_s8, %s1362_s20 }
  0x18   : > { %627 = vmatpush.bf16.msra.mxu0 %v1776_v12  ;;  %v1818_v37 = vld [vmem:[%s2216_s4 + $0x170] sm:$0xff]  ;;  %v1817_v41 = vld [vmem:[%s2216_s4 + $0x168] sm:$0xff]  ;;  %v1800_v42 = vld [vmem:[%s2216_s4 + $0xe0] sm:$0xff] }
  0x19   : > { %641 = vmatpush.bf16.msra.mxu1 %v1784_v13  ;;  %v1808_v43 = vld [vmem:[%s2216_s4 + $0x120] sm:$0xff]  ;;  %v1799_v46 = vld [vmem:[%s2216_s4 + $0xd8] sm:$0xff]  ;;  %v1798_v50 = vld [vmem:[%s2216_s4 + $0xd0] sm:$0xff] }
  0x1a   : > { %655 = vmatpush.bf16.msra.mxu2 %v1792_v14  ;;  %888 = vmatpush.bf16.msra.mxu3 %v1801_v38  ;;  %v1824_v44 = vld [vmem:[%s2216_s4 + $0x1a0] sm:$0xff]  ;;  %v1807_v47 = vld [vmem:[%s2216_s4 + $0x118] sm:$0xff]  ;;  %v1806_v51 = vld [vmem:[%s2216_s4 + $0x110] sm:$0xff] }
  0x1b   : > { %v1816_v45 = vld [vmem:[%s2216_s4 + $0x160] sm:$0xff]  ;;  %v1823_v48 = vld [vmem:[%s2216_s4 + $0x198] sm:$0xff]  ;;  %v1822_v52 = vld [vmem:[%s2216_s4 + $0x190] sm:$0xff] }
  0x1c   : > { %628 = vmatpush.bf16.msra.mxu0 %v1775_v15  ;;  %v1815_v49 = vld [vmem:[%s2216_s4 + $0x158] sm:$0xff]  ;;  %v1814_v53 = vld [vmem:[%s2216_s4 + $0x150] sm:$0xff]  ;;  %v1797_v54 = vld [vmem:[%s2216_s4 + $0xc8] sm:$0xff] }
  0x1d   : > { %642 = vmatpush.bf16.msra.mxu1 %v1783_v16  ;;  %v1805_v55 = vld [vmem:[%s2216_s4 + $0x108] sm:$0xff]  ;;  %v1796_v58 = vld [vmem:[%s2216_s4 + $0xc0] sm:$0xff]  ;;  %v1830_v34 = vld [vmem:[%s2216_s4 + $0x1d0] sm:$0xff] }
  0x1e   : > { %656 = vmatpush.bf16.msra.mxu2 %v1791_v17  ;;  %889 = vmatpush.bf16.msra.mxu3 %v1800_v42  ;;  %v1821_v56 = vld [vmem:[%s2216_s4 + $0x188] sm:$0xff]  ;;  %v1804_v59 = vld [vmem:[%s2216_s4 + $0x100] sm:$0xff] }
  0x1f   : > { %v1813_v57 = vld [vmem:[%s2216_s4 + $0x148] sm:$0xff]  ;;  %v1820_v60 = vld [vmem:[%s2216_s4 + $0x180] sm:$0xff] }
  0x20   : > { %629 = vmatpush.bf16.msra.mxu0 %v1774_v19  ;;  %v1812_v61 = vld [vmem:[%s2216_s4 + $0x140] sm:$0xff] }
  0x21   : > { %643 = vmatpush.bf16.msra.mxu1 %v1782_v20  ;;  %v1864_v62 = vld [vmem:[%s2217_s5] ss:$0 sm:$0xff] }
  0x22   : > { %657 = vmatpush.bf16.msra.mxu2 %v1790_v21  ;;  %890 = vmatpush.bf16.msra.mxu3 %v1799_v46  ;;  %v1828_v38 = vld [vmem:[%s2216_s4 + $0x1c0] sm:$0xff] }
  0x24   : > { %630 = vmatpush.bf16.msra.mxu0 %v1773_v22 }
  0x25   : > { %644 = vmatpush.bf16.msra.mxu1 %v1781_v23  ;;  %v1835_v23 = vld [vmem:[%s2216_s4 + $0x1f8] sm:$0xff] }
  0x26   : > { %658 = vmatpush.bf16.msra.mxu2 %v1789_v24  ;;  %891 = vmatpush.bf16.msra.mxu3 %v1798_v50  ;;  %v1843_v24 = vld [vmem:[%s2216_s4 + $0x238] sm:$0xff] }
  0x28   : > { %631 = vmatpush.bf16.msra.mxu0 %v1772_v25  ;;  %v1834_v25 = vld [vmem:[%s2216_s4 + $0x1f0] sm:$0xff] }
  0x29   : > { %645 = vmatpush.bf16.msra.mxu1 %v1780_v26  ;;  %v1842_v26 = vld [vmem:[%s2216_s4 + $0x230] sm:$0xff] }
  0x2a   : > { %659 = vmatpush.bf16.msra.mxu2 %v1788_v27  ;;  %892 = vmatpush.bf16.msra.mxu3 %v1797_v54  ;;  %v1833_v27 = vld [vmem:[%s2216_s4 + $0x1e8] sm:$0xff] }
  0x2b   : > { %632 = vmatmul.bf16.vlgmr.msra.gmra.mxu0 %v1771_v31  ;;  %v1831_v31 = vld [vmem:[%s2216_s4 + $0x1d8] sm:$0xff] }
  0x2c   : > { %900 = vmatpush.bf16.msrb.mxu0 %v1811_v28  ;;  %646 = vmatmul.bf16.vlgmr.msra.gmra.mxu1 %v2036_v32  ;;  %v1841_v28 = vld [vmem:[%s2216_s4 + $0x228] sm:$0xff] }
  0x2d   : > { %914 = vmatpush.bf16.msrb.mxu1 %v1819_v30  ;;  %660 = vmatmul.bf16.vlgmr.msra.gmra.mxu2 %v2038_v33  ;;  %v1840_v30 = vld [vmem:[%s2216_s4 + $0x220] sm:$0xff] }
  0x2e   : > { %1138 = vmatpush.bf16.msrb.mxu2 %v1827_v29  ;;  %893 = vmatpush.bf16.msra.mxu3 %v1796_v58  ;;  %v1832_v29 = vld [vmem:[%s2216_s4 + $0x1e0] sm:$0xff] }
  0x30   : > { %901 = vmatpush.bf16.msrb.mxu0 %v1810_v35  ;;  %v1838_v35 = vld [vmem:[%s2216_s4 + $0x210] sm:$0xff] }
  0x31   : > { %915 = vmatpush.bf16.msrb.mxu1 %v1818_v37  ;;  %v1837_v37 = vld [vmem:[%s2216_s4 + $0x208] sm:$0xff] }
  0x32   : > { %1139 = vmatpush.bf16.msrb.mxu2 %v1826_v36  ;;  %1152 = vmatpush.bf16.msrb.mxu3 %v1835_v23  ;;  %v1829_v36 = vld [vmem:[%s2216_s4 + $0x1c8] sm:$0xff] }
  0x34   : > { %902 = vmatpush.bf16.msrb.mxu0 %v1809_v39  ;;  %v1836_v39 = vld [vmem:[%s2216_s4 + $0x200] sm:$0xff] }
  0x35   : > { %916 = vmatpush.bf16.msrb.mxu1 %v1817_v41 }
  0x36   : > { %1140 = vmatpush.bf16.msrb.mxu2 %v1825_v40  ;;  %1153 = vmatpush.bf16.msrb.mxu3 %v1834_v25  ;;  %v1865_v40 = vld [vmem:[%s2217_s5 + $0x1] ss:$0 sm:$0xff] }
  0x38   : > { %903 = vmatpush.bf16.msrb.mxu0 %v1808_v43 }
  0x39   : > { %917 = vmatpush.bf16.msrb.mxu1 %v1816_v45 }
  0x3a   : > { %1141 = vmatpush.bf16.msrb.mxu2 %v1824_v44  ;;  %1154 = vmatpush.bf16.msrb.mxu3 %v1833_v27 }
  0x3c   : > { %904 = vmatpush.bf16.msrb.mxu0 %v1807_v47 }
  0x3d   : > { %918 = vmatpush.bf16.msrb.mxu1 %v1815_v49 }
  0x3e   : > { %1142 = vmatpush.bf16.msrb.mxu2 %v1823_v48  ;;  %1155 = vmatpush.bf16.msrb.mxu3 %v1832_v29 }
  0x40   : > { %905 = vmatpush.bf16.msrb.mxu0 %v1806_v51 }
  0x41   : > { %919 = vmatpush.bf16.msrb.mxu1 %v1814_v53 }
  0x42   : > { %1143 = vmatpush.bf16.msrb.mxu2 %v1822_v52  ;;  %1156 = vmatpush.bf16.msrb.mxu3 %v1831_v31 }
  0x44   : > { %906 = vmatpush.bf16.msrb.mxu0 %v1805_v55 }
  0x45   : > { %920 = vmatpush.bf16.msrb.mxu1 %v1813_v57 }
  0x46   : > { %1144 = vmatpush.bf16.msrb.mxu2 %v1821_v56  ;;  %1157 = vmatpush.bf16.msrb.mxu3 %v1830_v34 }
  0x48   : > { %907 = vmatpush.bf16.msrb.mxu0 %v1804_v59 }
  0x49   : > { %921 = vmatpush.bf16.msrb.mxu1 %v1812_v61 }
  0x4a   : > { %1145 = vmatpush.bf16.msrb.mxu2 %v1820_v60  ;;  %1158 = vmatpush.bf16.msrb.mxu3 %v1829_v36 }
  0x4b   : > { %908 = vmatmul.bf16.vlgmr.msrb.gmra.mxu0 %v2036_v32  ;;  %v1839_v32 = vld [vmem:[%s2216_s4 + $0x218] sm:$0xff] }
  0x4c   : > { %922 = vmatmul.bf16.vlgmr.msrb.gmra.mxu1 %v2038_v33  ;;  %1166 = vmatpush.bf16.msra.mxu0 %v1843_v24 }
  0x4e   : > { %1159 = vmatpush.bf16.msrb.mxu3 %v1828_v38 }
  0x50   : > { %1167 = vmatpush.bf16.msra.mxu0 %v1842_v26 }
  0x54   : > { %1168 = vmatpush.bf16.msra.mxu0 %v1841_v28 }
  0x58   : > { %1169 = vmatpush.bf16.msra.mxu0 %v1840_v30 }
  0x5c   : > { %1170 = vmatpush.bf16.msra.mxu0 %v1839_v32 }
  0x60   : > { %1171 = vmatpush.bf16.msra.mxu0 %v1838_v35 }
  0x64   : > { %1172 = vmatpush.bf16.msra.mxu0 %v1837_v37 }
  0x68   : > { %1173 = vmatpush.bf16.msra.mxu0 %v1836_v39 }
  0x6b   : > { %1174 = vmatmul.bf16.vlgmr.msra.gmra.mxu0 %v2038_v33 }
  0x81   : > { %v2131_v6 = vpop.permute.xlu0 %670 }
  0x89   : > { %v2134_v15 = vpop.permute.xlu0 %675 }
  0xa8   : > { %v633_v63 = vpop.f32.mrf.mxu0 }
  0xa9   : > { %v634_v0 = vadd.f32 %v1864_v62, %v633_v63  ;;  %v647_v1 = vpop.f32.mrf.mxu1  ;;  %v1866_v63 = vld [vmem:[%s2217_s5 + $0x2] ss:$0 sm:$0xff] }
  0xab   : > { %v648_v2 = vadd.f32 %v647_v1, %v634_v0 }
  0xb0   : > { %v661_v3 = vpop.f32.mrf.mxu2  ;;  %v635_v5 = vpop.f32.mrf.mxu0 }
  0xb1   : > { %v662_v4 = vadd.f32 %v661_v3, %v648_v2  ;;  %v636_v7 = vadd.f32 %v1864_v62, %v635_v5  ;;  %v649_v9 = vpop.f32.mrf.mxu1 }
  0xb3   : > { %v666_v8 = vmax.f32 %v662_v4, 0.0  ;;  %v650_v10 = vadd.f32 %v649_v9, %v636_v7 }
  0xb5   : > { %v678_v12 = vmul.f32 %v2131_v6, %v666_v8 }
  0xb7   : > { %v680_v17 = vpack.c.bf16 %v678_v12, %v678_v12 }
  0xb8   : > { %v663_v11 = vpop.f32.mrf.mxu2 }
  0xb9   : > { %v664_v13 = vadd.f32 %v663_v11, %v650_v10  ;;  %v684_v20 = vunpack.c.l.b16 %v680_v17 }
  0xbb   : > { %v667_v14 = vmax.f32 %v664_v13, 0.0 }
  0xbd   : > { %v679_v16 = vmul.f32 %v2134_v15, %v667_v14 }
  0xbf   : > { %v1847_v18 = vpack.c.bf16 %v679_v16, %v678_v12  ;;  %v681_v19 = vpack.c.bf16 %v679_v16, %v679_v16 }
  0xc1   : > { %1848 = vst [vmem:[%s388_s29] sm:$0xff] %v1847_v18   ;;  %v685_v21 = vunpack.c.l.b16 %v681_v19 }
  0xc3   : > { %v686_v22 = vpack.c.b16 %v685_v21, %v684_v20 }
  0xc5   : > { %894 = vmatmul.bf16.vlgmr.msra.gmra.mxu3 %v686_v22  ;;  %1146 = vmatmul.bf16.vlgmr.msrb.gmra.mxu2 %v686_v22 }
  0xc8   : > { %v909_v41 = vpop.f32.mrf.mxu0 }
  0xc9   : > { %v923_v44 = vpop.f32.mrf.mxu1 }
  0xd0   : > { %v911_v50 = vpop.f32.mrf.mxu0 }
  0xd1   : > { %v925_v52 = vpop.f32.mrf.mxu1 }
  0xe8   : > { %v1175_v1 = vpop.f32.mrf.mxu0 }
  0xf0   : > { %v1177_v12 = vpop.f32.mrf.mxu0 }
 0x148   : > { %v895_v42 = vpop.f32.mrf.mxu3  ;;  %v1147_v62 = vpop.f32.mrf.mxu2 }
 0x149   : > { %v896_v43 = vadd.f32 %v1865_v40, %v895_v42  ;;  %v1148_v0 = vadd.f32 %v1866_v63, %v1147_v62 }
 0x14b   : > { %v910_v45 = vadd.f32 %v909_v41, %v896_v43 }
 0x14d   : > { %v924_v46 = vadd.f32 %v923_v44, %v910_v45 }
 0x14f   : > { %v928_v48 = vmax.f32 %v924_v46, 0.0 }
 0x150   : > { %v897_v47 = vpop.f32.mrf.mxu3  ;;  %v1149_v5 = vpop.f32.mrf.mxu2 }
 0x151   : > { %v898_v49 = vadd.f32 %v1865_v40, %v897_v47  ;;  %v930_v53 = vmul.f32 %v928_v48, %v2131_v6  ;;  %v1150_v8 = vadd.f32 %v1866_v63, %v1149_v5 }
 0x153   : > { %v912_v51 = vadd.f32 %v911_v50, %v898_v49  ;;  %v932_v56 = vpack.c.bf16 %v930_v53, %v930_v53 }
 0x155   : > { %v926_v33 = vadd.f32 %v925_v52, %v912_v51  ;;  %v936_v59 = vunpack.c.l.b16 %v932_v56 }
 0x157   : > { %v929_v54 = vmax.f32 %v926_v33, 0.0 }
 0x159   : > { %v931_v55 = vmul.f32 %v929_v54, %v2134_v15 }
 0x15b   : > { %v1852_v57 = vpack.c.bf16 %v931_v55, %v930_v53  ;;  %v933_v58 = vpack.c.bf16 %v931_v55, %v931_v55 }
 0x15d   : > { %1853 = vst [vmem:[%s394_s9] sm:$0xff] %v1852_v57   ;;  %v937_v60 = vunpack.c.l.b16 %v933_v58 }
 0x15f   : > { %v938_v61 = vpack.c.b16 %v937_v60, %v936_v59 }
 0x161   : > { %1160 = vmatmul.bf16.vlgmr.msrb.gmra.mxu3 %v938_v61 }
 0x1e4   : > { %v1161_v2 = vpop.f32.mrf.mxu3 }
 0x1e5   : > { %v1162_v3 = vadd.f32 %v1161_v2, %v1148_v0 }
 0x1e7   : > { %v1176_v4 = vadd.f32 %v1175_v1, %v1162_v3 }
 0x1e9   : > { %v1180_v7 = vmax.f32 %v1176_v4, 0.0 }
 0x1eb   : > { %v1182_v9 = vmul.f32 %v1180_v7, %v2131_v6 }
 0x1ec   : > { %v1163_v10 = vpop.f32.mrf.mxu3 }
 0x1ed   : > { %1188 = vst [vmem:[%s400_s12] sm:$0xff] %v1182_v9  ;;  %v1164_v11 = vadd.f32 %v1163_v10, %v1150_v8 }
 0x1ef   : > { %v1178_v13 = vadd.f32 %v1177_v12, %v1164_v11 }
 0x1f1   : > { %v1181_v14 = vmax.f32 %v1178_v13, 0.0 }
 0x1f3   : > { %v1183_v16 = vmul.f32 %v1181_v14, %v2134_v15 }
 0x1f5   : > { %1189 = vst [vmem:[%s400_s12 + $0x8] sm:$0xff] %v1183_v16 }
 0x1f6 PF: > { %s19_s27 = sadd.s32 1, %s1873_s27  }
 0x1f7   : > { %p16_p4 = scmp.ge.s32.totalorder %s19_s27, 4  }
 0x1f9   :  { %18 = sbr.rel (!%p16_p4) target bundleno = 1 (0x1), region = 111 }

// kernel: ssg_forward.3
= control target key start
LH: loop header
LB: loop body
LE: loop exit
PB: predicated region body
PF: predicated region fallthrough
CT: control target
= control target key end

     0   :  { %15 = vsyncpa [#allocation3], 0  ;;  %s1726_s30 = smov 0   ;;  %s2087_s0 = inlined_call_operand.vmem [shape: bf16[32,128], index: 0, kind: input, shape index: {}]   ;;  %s2088_s1 = inlined_call_operand.vmem [shape: f32[32,1], index: 1, kind: input, shape index: {}]   ;;  %s2089_s2 = inlined_call_operand.vmem [shape: bf16[32,4,128], index: 2, kind: input, shape index: {}]   ;;  %s2090_s3 = inlined_call_operand.vmem [shape: f32[32,4], index: 3, kind: input, shape index: {}]   ;;  %s2091_s4 = inlined_call_operand.vmem [shape: bf16[128,256], index: 4, kind: input, shape index: {}]   ;;  %s2092_s5 = inlined_call_operand.vmem [shape: f32[1,128], index: 5, kind: input, shape index: {}]   ;;  %s2093_s6 = inlined_call_operand.hbm [shape: bf16[128,128], index: 6, kind: input, shape index: {}]   ;;  %s2094_s7 = inlined_call_operand.vmem [shape: f32[1,128], index: 7, kind: input, shape index: {}]   ;;  %s2095_s8 = inlined_call_operand.vmem [shape: f32[32,128], index: 8, kind: output, shape index: {0}]   ;;  %s2096_s9 = inlined_call_operand.vmem [shape: f32[32,128], index: 9, kind: output, shape index: {1}]  }
   0x1 LB: > { %s283_s12 = sshll.u32 %s2093_s6, 4  ;;  %s1735_s13 = sadd.s32 4294967295, %s1667_s30   ;;  %s1667_s30 = sphi %s1726_s30, %s21_s30   ;;  %s284_s12 = int_to_ptr.hbm [resolvable:$true] %s283_s12 }
   0x2   : > { %p1446_p0 = scmp.ge.s32.totalorder %s1667_s30, 1  ;;  %p266_p1 = scmp.lt.s32.totalorder %s1667_s30, 3 }
   0x3   : > { %p1598_p2 = scmp.eq.s32.totalorder %s1735_s13, 0  ;;  %s1669_s14 = smov [#allocation2]  }
   0x4   : > { %p267_p3 = pnand %p1446_p0, %p266_p1  ;;  %s285_s15 = sshll.u32 %s1669_s14, 4  ;;  %s286_s15 = int_to_ptr.vmem [resolvable:$true] %s285_s15 }
   0x5   : > { %s1670_s16 = smov 64   ;;  %s1671_s17 = smov 4  }
   0x6   : > { %p1594_p4 = pneg %p267_p3  ;;  %340 = sbr.rel (%p267_p3) target bundleno = 430 (0x1ae), region = 52 }
   0x8   : > { %p1595_p5 = pnand %p1598_p2, %p1594_p4 }
   0xa   : > { %1597 = dma.hbm_to_vmem [thread:$0]  (!%p1595_p5), %s284_s12, 1024, %s286_s15, [#allocation3], %s1670_s16, %s1670_s16, %s1671_s17  }
   0xb   : > { %1662 = dma.done.wait (%p1598_p2), [#allocation3], 1024  }
   0xc   : > { %1664 = vsyncadd (%p1598_p2), [#allocation3], 4294966272  ;;  %s1455_s18 = sshll.u32 %s1735_s13, 4  ;;  %v1525_v0 = vld [vmem:[%s2091_s4 + $0x70] sm:$0xf]  ;;  %v1759_v8 = vld [vmem:[#allocation2 + $0x38] sm:$0xff] }
   0xd   : > { %p410_p6 = scmp.lt.s32.totalorder %s1455_s18, 31  ;;  %v1581_v1 = vld [vmem:[%s2091_s4 + $0x74] sm:$0xf0]  ;;  %v1517_v2 = vld [vmem:[%s2091_s4 + $0x60] sm:$0xf]  ;;  %790 = vmatpush.bf16.msra.mxu2 %v1759_v8  ;;  %954 = vmatpush.bf16.msra.mxu3 %v1759_v8  ;;  %v1796_v21 = vld [vmem:[#allocation2 + $0x28] sm:$0xff] }
   0xe   : > { %v1526_v3 = vor.u32 %v1581_v1, %v1525_v0  ;;  %v1579_v4 = vld [vmem:[%s2091_s4 + $0x64] sm:$0xf0]  ;;  %v1509_v6 = vld [vmem:[%s2091_s4 + $0x50] sm:$0xf]  ;;  %v1577_v7 = vld [vmem:[%s2091_s4 + $0x54] sm:$0xf0] }
   0xf   : > { %s2099_s18 = smov (!%p410_p6, %s1455_s18), 31  ;;  %v1518_v5 = vor.u32 %v1579_v4, %v1517_v2  ;;  %v1580_v9 = vld [vmem:[%s2091_s4 + $0x74] sm:$0xf]  ;;  %v1527_v10 = vld [vmem:[%s2091_s4 + $0x78] sm:$0xf0]  ;;  %v1510_v14 = vor.u32 %v1577_v7, %v1509_v6  ;;  %s1451_s12 = sshll.u32 %s1735_s13, 1 }
  0x10   : > { %537 = vmatpush.bf16.msra.mxu0 %v1526_v3  ;;  %v1530_v11 = vor.u32 %v1580_v9, %v1527_v10  ;;  %v1769_v12 = vld [vmem:[#allocation2 + $0x30] sm:$0xff]  ;;  %v1578_v13 = vld [vmem:[%s2091_s4 + $0x64] sm:$0xf]  ;;  %s1456_s19 = sshll.u32 %s2099_s18, 1  ;;  %v1519_v15 = vld [vmem:[%s2091_s4 + $0x68] sm:$0xf0] }
  0x11   : > { %v1501_v16 = vld [vmem:[%s2091_s4 + $0x40] sm:$0xf]  ;;  %v1575_v17 = vld [vmem:[%s2091_s4 + $0x44] sm:$0xf0]  ;;  %v1522_v18 = vor.u32 %v1578_v13, %v1519_v15  ;;  %v1576_v19 = vld [vmem:[%s2091_s4 + $0x54] sm:$0xf]  ;;  %s1792_s11 = scalar_lea.vmem %s2089_s2, %s1456_s19  ;;  %791 = vmatpush.bf16.msra.mxu2 %v1769_v12  ;;  %955 = vmatpush.bf16.msra.mxu3 %v1769_v12 }
  0x12   : > { %551 = vmatpush.bf16.msra.mxu1 %v1530_v11  ;;  %v1511_v20 = vld [vmem:[%s2091_s4 + $0x58] sm:$0xf0]  ;;  %v1502_v22 = vor.u32 %v1575_v17, %v1501_v16  ;;  %v1493_v23 = vld [vmem:[%s2091_s4 + $0x30] sm:$0xf]  ;;  %v1573_v24 = vld [vmem:[%s2091_s4 + $0x34] sm:$0xf0] }
  0x13   : > { %v1514_v25 = vor.u32 %v1576_v19, %v1511_v20  ;;  %v608_v26 = vld [vmem:[%s1792_s11] sm:$0x1]  ;;  %v1574_v27 = vld [vmem:[%s2091_s4 + $0x44] sm:$0xf]  ;;  %v1503_v28 = vld [vmem:[%s2091_s4 + $0x48] sm:$0xf0]  ;;  %v1494_v31 = vor.u32 %v1573_v24, %v1493_v23 }
  0x14   : > { %538 = vmatpush.bf16.msra.mxu0 %v1518_v5  ;;  %v1814_v29 = vld [vmem:[#allocation2 + $0x20] sm:$0xff]  ;;  %v609_v30 = vld [vmem:[%s1792_s11 + $0x2] sm:$0x1]  ;;  %p1817_p7 = scmp.lt.s32.totalorder %s1451_s12, 3  ;;  %625 = vst [vmem:[#allocation1] ss:$4 sm:$0xff] %v608_v26  ;;  %v1506_v34 = vor.u32 %v1574_v27, %v1503_v28 }
  0x15   : > { %792 = vmatpush.bf16.msra.mxu2 %v1796_v21  ;;  %956 = vmatpush.bf16.msra.mxu3 %v1796_v21  ;;  %v1485_v32 = vld [vmem:[%s2091_s4 + $0x20] sm:$0xf]  ;;  %v1571_v33 = vld [vmem:[%s2091_s4 + $0x24] sm:$0xf0]  ;;  %v1572_v35 = vld [vmem:[%s2091_s4 + $0x34] sm:$0xf] }
  0x16   : > { %552 = vmatpush.bf16.msra.mxu1 %v1522_v18  ;;  %v1495_v36 = vld [vmem:[%s2091_s4 + $0x38] sm:$0xf0]  ;;  %630 = vst [vmem:[#allocation1 + $0x20] ss:$4 sm:$0xff] %v609_v30  ;;  %v1835_v37 = vld [vmem:[#allocation2 + $0x18] sm:$0xff]  ;;  %v1486_v38 = vor.u32 %v1571_v33, %v1485_v32  ;;  %s2101_s12 = smov (!%p1817_p7, %s1451_s12), 3 }
  0x17   : > { %v1477_v39 = vld [vmem:[%s2091_s4 + $0x10] sm:$0xf]  ;;  %v1569_v40 = vld [vmem:[%s2091_s4 + $0x14] sm:$0xf0]  ;;  %v1498_v41 = vor.u32 %v1572_v35, %v1495_v36  ;;  %v610_v42 = vld [vmem:[%s1792_s11 + $0x4] sm:$0x1] }
  0x18   : > { %539 = vmatpush.bf16.msra.mxu0 %v1510_v14  ;;  %v1570_v43 = vld [vmem:[%s2091_s4 + $0x24] sm:$0xf]  ;;  %v1487_v44 = vld [vmem:[%s2091_s4 + $0x28] sm:$0xf0]  ;;  %v1856_v45 = vld [vmem:[#allocation2 + $0x10] sm:$0xff]  ;;  %v1478_v48 = vor.u32 %v1569_v40, %v1477_v39  ;;  %s1452_s23 = sshll.u32 %s2101_s12, 2 }
  0x19   : > { %793 = vmatpush.bf16.msra.mxu2 %v1814_v29  ;;  %957 = vmatpush.bf16.msra.mxu3 %v1814_v29  ;;  %v611_v46 = vld [vmem:[%s1792_s11 + $0x6] sm:$0x1]  ;;  %v1469_v49 = vld [vmem:[%s2091_s4] sm:$0xf]  ;;  %v1567_v50 = vld [vmem:[%s2091_s4 + $0x4] sm:$0xf0]  ;;  %v1490_v51 = vor.u32 %v1570_v43, %v1487_v44  ;;  %s401_s14 = scalar_lea.vmem %s2087_s0, %s1452_s23 }
  0x1a   : > { %553 = vmatpush.bf16.msra.mxu1 %v1514_v25  ;;  %v1568_v53 = vld [vmem:[%s2091_s4 + $0x14] sm:$0xf]  ;;  %v1479_v54 = vld [vmem:[%s2091_s4 + $0x18] sm:$0xf0]  ;;  %v1470_v56 = vor.u32 %v1567_v50, %v1469_v49  ;;  %v612_v58 = vld [vmem:[%s1792_s11 + $0x8] sm:$0x1] }
  0x1b   : > { %v1859_v47 = vld.sshfl [vmem:[#allocation1] sm:$0xff pattern:$0x73625140]  ;;  %v1583_v55 = vld [vmem:[#allocation2 + $0x8] sm:$0xff]  ;;  %v1482_v57 = vor.u32 %v1568_v53, %v1479_v54  ;;  %v1471_v61 = vld [vmem:[%s2091_s4 + $0x8] sm:$0xf0] }
  0x1c   : > { %540 = vmatpush.bf16.msra.mxu0 %v1502_v22  ;;  %634 = vst [vmem:[#allocation1] ss:$4 sm:$0xff] %v610_v42  ;;  %v1565_v59 = vld [vmem:[%s401_s14] sm:$0xff]  ;;  %v1888_v62 = vld [vmem:[#allocation2] sm:$0xff]  ;;  %v616_v7 = vld [vmem:[%s1792_s11 + $0x10] sm:$0x1]  ;;  %v689_v19 = vunpack.c.l.b16 %v1859_v47 }
  0x1d   : > { %794 = vmatpush.bf16.msra.mxu2 %v1835_v37  ;;  %958 = vmatpush.bf16.msra.mxu3 %v1835_v37  ;;  %v1868_v52 = vld.sshfl [vmem:[#allocation1 + $0x20] sm:$0xff pattern:$0x73625140]  ;;  %v613_v63 = vld [vmem:[%s1792_s11 + $0xa] sm:$0x1]  ;;  %vm706_vm0 = vcmask 1041409  }
  0x1e   : > { %554 = vmatpush.bf16.msra.mxu1 %v1506_v34  ;;  %638 = vst [vmem:[#allocation1 + $0x20] ss:$4 sm:$0xff] %v611_v46  ;;  %v1566_v60 = vld [vmem:[%s2091_s4 + $0x4] sm:$0xf]  ;;  %v614_v3 = vld [vmem:[%s1792_s11 + $0xc] sm:$0x1]  ;;  %v690_v15 = vunpack.c.l.b16 %v1868_v52 }
  0x1f   : > { %v1474_v1 = vor.u32 %v1566_v60, %v1471_v61  ;;  %v615_v4 = vld [vmem:[%s1792_s11 + $0xe] sm:$0x1]  ;;  %v617_v9 = vld [vmem:[%s1792_s11 + $0x12] sm:$0x1]  ;;  %v618_v11 = vld [vmem:[%s1792_s11 + $0x14] sm:$0x1] }
  0x20   : > { %541 = vmatpush.bf16.msra.mxu0 %v1494_v31  ;;  %v620_v16 = vld [vmem:[%s1792_s11 + $0x18] sm:$0x1]  ;;  %v705_v20 = vrot.slane %v690_v15, 7  ;;  %vm709_vm1 = vcmask 1042434   ;;  %v622_v34 = vld [vmem:[%s1792_s11 + $0x1c] sm:$0x1] }
  0x21   : > { %795 = vmatpush.bf16.msra.mxu2 %v1856_v45  ;;  %959 = vmatpush.bf16.msra.mxu3 %v1856_v45  ;;  %vm712_vm2 = vcmask 1043459   ;;  %vm715_vm3 = vcmask 1044484   ;;  %vm718_vm4 = vcmask 1045509   ;;  %vm721_vm5 = vcmask 1046534   ;;  %s1989_s20 = sshll.u32 %s2101_s12, 3 }
  0x22   : > { %555 = vmatpush.bf16.msra.mxu1 %v1498_v41  ;;  %vm724_vm6 = vcmask 1047559   ;;  %s1996_s13 = scalar_lea.vmem %s2090_s3, %s1989_s20  ;;  %s407_s25 = scalar_lea.vmem %s2088_s1, %s1989_s20 }
  0x23   : > { %v635_v0 = vld.sshfl [vmem:[#allocation1] sm:$0xff pattern:$0x73625140]  ;;  %s425_s18 = scalar_lea.vmem %s2095_s8, %s1989_s20  ;;  %s431_s15 = scalar_lea.vmem %s2096_s9, %s1989_s20 }
  0x24   : > { %542 = vmatpush.bf16.msra.mxu0 %v1486_v38  ;;  %642 = vst [vmem:[#allocation1] ss:$4 sm:$0xff] %v612_v58  ;;  %v691_v17 = vunpack.c.l.b16 %v635_v0 }
  0x25   : > { %796 = vmatpush.bf16.msra.mxu2 %v1583_v55  ;;  %960 = vmatpush.bf16.msra.mxu3 %v1583_v55  ;;  %v639_v2 = vld.sshfl [vmem:[#allocation1 + $0x20] sm:$0xff pattern:$0x73625140] }
  0x26   : > { %556 = vmatpush.bf16.msra.mxu1 %v1490_v51  ;;  %646 = vst [vmem:[#allocation1 + $0x20] ss:$4 sm:$0xff] %v613_v63  ;;  %v692_v23 = vunpack.c.l.b16 %v639_v2  ;;  %v708_v27 = vrot.slane %v691_v17, 6  ;;  %v834_v17 = vld [vmem:[%s1792_s11 + $0xe] sm:$0x1] }
  0x28   : > { %543 = vmatpush.bf16.msra.mxu0 %v1478_v48  ;;  %v711_v32 = vrot.slane %v692_v23, 5 }
  0x29   : > { %797 = vmatpush.bf16.msra.mxu2 %v1888_v62  ;;  %961 = vmatpush.bf16.msra.mxu3 %v1888_v62 }
  0x2a   : > { %557 = vmatpush.bf16.msra.mxu1 %v1482_v57 }
  0x2b   : > { %v643_v5 = vld.sshfl [vmem:[#allocation1] sm:$0xff pattern:$0x73625140] }
  0x2c   : > { %544 = vmatpush.bf16.msra.mxu0 %v1470_v56  ;;  %650 = vst [vmem:[#allocation1] ss:$4 sm:$0xff] %v614_v3  ;;  %v693_v30 = vunpack.c.l.b16 %v643_v5 }
  0x2d   : > { %v1899_v6 = vld.sshfl [vmem:[#allocation1 + $0x20] sm:$0xff pattern:$0x73625140] }
  0x2e   : > { %558 = vmatpush.bf16.msra.mxu1 %v1474_v1  ;;  %654 = vst [vmem:[#allocation1 + $0x20] ss:$4 sm:$0xff] %v615_v4  ;;  %v694_v38 = vunpack.c.l.b16 %v1899_v6  ;;  %v714_v40 = vrot.slane %v693_v30, 4  ;;  %v829_v6 = vld [vmem:[%s1792_s11 + $0x4] sm:$0x1] }
  0x2f   : > { %545 = vmatmul.bf16.vlgmr.msra.gmra.mxu0 %v1565_v59 }
  0x30   : > { %1113 = vmatpush.bf16.msrb.mxu0 %v1759_v8  ;;  %v717_v48 = vrot.slane %v694_v38, 3 }
  0x31   : > { %559 = vmatmul.bf16.vlgmr.msra.gmra.mxu1 %v1565_v59  ;;  %v828_v59 = vld [vmem:[%s1792_s11 + $0x2] sm:$0x1] }
  0x32   : > { %1272 = vmatpush.bf16.msrb.mxu1 %v1759_v8 }
  0x33   : > { %v1906_v8 = vld.sshfl [vmem:[#allocation1] sm:$0xff pattern:$0x73625140] }
  0x34   : > { %1114 = vmatpush.bf16.msrb.mxu0 %v1769_v12  ;;  %658 = vst [vmem:[#allocation1] ss:$4 sm:$0xff] %v616_v7  ;;  %v695_v46 = vunpack.c.l.b16 %v1906_v8  ;;  %v830_v8 = vld [vmem:[%s1792_s11 + $0x6] sm:$0x1] }
  0x35   : > { %v1909_v10 = vld.sshfl [vmem:[#allocation1 + $0x20] sm:$0xff pattern:$0x73625140] }
  0x36   : > { %1273 = vmatpush.bf16.msrb.mxu1 %v1769_v12  ;;  %662 = vst [vmem:[#allocation1 + $0x20] ss:$4 sm:$0xff] %v617_v9  ;;  %v619_v12 = vld [vmem:[%s1792_s11 + $0x16] sm:$0x1]  ;;  %v696_v52 = vunpack.c.l.b16 %v1909_v10  ;;  %v720_v53 = vrot.slane %v695_v46, 2 }
  0x38   : > { %1115 = vmatpush.bf16.msrb.mxu0 %v1796_v21  ;;  %v723_v61 = vrot.slane %v696_v52, 1 }
  0x3a   : > { %1274 = vmatpush.bf16.msrb.mxu1 %v1796_v21  ;;  %v621_v21 = vld [vmem:[%s1792_s11 + $0x1a] sm:$0x1] }
  0x3b   : > { %v659_v13 = vld.sshfl [vmem:[#allocation1] sm:$0xff pattern:$0x73625140] }
  0x3c   : > { %1116 = vmatpush.bf16.msrb.mxu0 %v1814_v29  ;;  %666 = vst [vmem:[#allocation1] ss:$4 sm:$0xff] %v618_v11  ;;  %v697_v26 = vunpack.c.l.b16 %v659_v13  ;;  %v832_v13 = vld [vmem:[%s1792_s11 + $0xa] sm:$0x1] }
  0x3d   : > { %v663_v14 = vld.sshfl [vmem:[#allocation1 + $0x20] sm:$0xff pattern:$0x73625140] }
  0x3e   : > { %1275 = vmatpush.bf16.msrb.mxu1 %v1814_v29  ;;  %670 = vst [vmem:[#allocation1 + $0x20] ss:$4 sm:$0xff] %v619_v12  ;;  %v698_v18 = vunpack.c.l.b16 %v663_v14  ;;  %v707_v29 = vsel %vm706_vm0, %v705_v20, %v689_v19  ;;  %v831_v12 = vld [vmem:[%s1792_s11 + $0x8] sm:$0x1]  ;;  %v835_v20 = vld [vmem:[%s1792_s11 + $0x10] sm:$0x1] }
  0x3f   : > { %v710_v35 = vsel %vm709_vm1, %v708_v27, %v707_v29  ;;  %v839_v29 = vld [vmem:[%s1792_s11 + $0x18] sm:$0x1] }
  0x40   : > { %1117 = vmatpush.bf16.msrb.mxu0 %v1835_v37  ;;  %v726_v28 = vrot.slane %v698_v18, 7  ;;  %v713_v43 = vsel %vm712_vm2, %v711_v32, %v710_v35 }
  0x41   : > { %v716_v50 = vsel %vm715_vm3, %v714_v40, %v713_v43 }
  0x42   : > { %1276 = vmatpush.bf16.msrb.mxu1 %v1835_v37  ;;  %v727_v36 = vsel %vm706_vm0, %v726_v28, %v697_v26  ;;  %v623_v37 = vld [vmem:[%s1792_s11 + $0x1e] sm:$0x1]  ;;  %v719_v56 = vsel %vm718_vm4, %v717_v48, %v716_v50 }
  0x43   : > { %v667_v22 = vld.sshfl [vmem:[#allocation1] sm:$0xff pattern:$0x73625140]  ;;  %v722_v63 = vsel %vm721_vm5, %v720_v53, %v719_v56  ;;  %v842_v50 = vld [vmem:[%s1792_s11 + $0x1e] sm:$0x1] }
  0x44   : > { %1118 = vmatpush.bf16.msrb.mxu0 %v1856_v45  ;;  %674 = vst [vmem:[#allocation1] ss:$4 sm:$0xff] %v620_v16  ;;  %v699_v24 = vunpack.c.l.b16 %v667_v22  ;;  %v725_v3 = vsel %vm724_vm6, %v723_v61, %v722_v63  ;;  %v833_v16 = vld [vmem:[%s1792_s11 + $0xc] sm:$0x1] }
  0x45   : > { %v671_v25 = vld.sshfl [vmem:[#allocation1 + $0x20] sm:$0xff pattern:$0x73625140] }
  0x46   : > { %1277 = vmatpush.bf16.msrb.mxu1 %v1856_v45  ;;  %678 = vst [vmem:[#allocation1 + $0x20] ss:$4 sm:$0xff] %v621_v21  ;;  %v700_v31 = vunpack.c.l.b16 %v671_v25  ;;  %v728_v33 = vrot.slane %v699_v24, 6  ;;  %v836_v21 = vld [vmem:[%s1792_s11 + $0x12] sm:$0x1] }
  0x47   : > { %v837_v24 = vld [vmem:[%s1792_s11 + $0x14] sm:$0x1]  ;;  %v838_v25 = vld [vmem:[%s1792_s11 + $0x16] sm:$0x1] }
  0x48   : > { %1119 = vmatpush.bf16.msrb.mxu0 %v1583_v55  ;;  %v730_v41 = vrot.slane %v700_v31, 5  ;;  %v729_v44 = vsel %vm709_vm1, %v728_v33, %v727_v36 }
  0x4a   : > { %1278 = vmatpush.bf16.msrb.mxu1 %v1583_v55  ;;  %v731_v51 = vsel %vm712_vm2, %v730_v41, %v729_v44  ;;  %v827_v55 = vld [vmem:[%s1792_s11] sm:$0x1] }
  0x4b   : > { %v675_v39 = vld.sshfl [vmem:[#allocation1] sm:$0xff pattern:$0x73625140] }
  0x4c   : > { %1120 = vmatpush.bf16.msrb.mxu0 %v1888_v62  ;;  %682 = vst [vmem:[#allocation1] ss:$4 sm:$0xff] %v622_v34  ;;  %v701_v42 = vunpack.c.l.b16 %v675_v39  ;;  %v840_v34 = vld [vmem:[%s1792_s11 + $0x1a] sm:$0x1] }
  0x4d   : > { %v679_v45 = vld.sshfl [vmem:[#allocation1 + $0x20] sm:$0xff pattern:$0x73625140] }
  0x4e   : > { %1279 = vmatpush.bf16.msrb.mxu1 %v1888_v62  ;;  %686 = vst [vmem:[#allocation1 + $0x20] ss:$4 sm:$0xff] %v623_v37  ;;  %v702_v47 = vunpack.c.l.b16 %v679_v45  ;;  %v732_v49 = vrot.slane %v701_v42, 4 }
  0x50   : > { %v734_v54 = vrot.slane %v702_v47, 3  ;;  %v733_v57 = vsel %vm715_vm3, %v732_v49, %v731_v51  ;;  %v841_v47 = vld [vmem:[%s1792_s11 + $0x1c] sm:$0x1] }
  0x52   : > { %v735_v0 = vsel %vm718_vm4, %v734_v54, %v733_v57 }
  0x53   : > { %v683_v58 = vld.sshfl [vmem:[#allocation1] sm:$0xff pattern:$0x73625140] }
  0x54   : > { %v703_v60 = vunpack.c.l.b16 %v683_v58  ;;  %844 = vst [vmem:[#allocation1] ss:$4 sm:$0xff] %v827_v55 }
  0x55   : > { %v687_v62 = vld.sshfl [vmem:[#allocation1 + $0x20] sm:$0xff pattern:$0x73625140] }
  0x56   : > { %v704_v1 = vunpack.c.l.b16 %v687_v62  ;;  %v736_v2 = vrot.slane %v703_v60, 2  ;;  %849 = vst [vmem:[#allocation1 + $0x20] ss:$4 sm:$0xff] %v828_v59 }
  0x58   : > { %v737_v4 = vsel %vm721_vm5, %v736_v2, %v735_v0  ;;  %v738_v5 = vrot.slane %v704_v1, 1 }
  0x5a   : > { %v739_v7 = vsel %vm724_vm6, %v738_v5, %v737_v4  ;;  %v986_v4 = vld [vmem:[%s1792_s11] sm:$0x2] }
  0x5b   : > { %v740_v9 = vpack.c.b16 %v739_v7, %v725_v3  ;;  %v845_v10 = vld.sshfl [vmem:[#allocation1] sm:$0xff pattern:$0x73625140] }
  0x5c   : > { %853 = vst [vmem:[#allocation1] ss:$4 sm:$0xff] %v829_v6  ;;  %v908_v28 = vunpack.c.l.b16 %v845_v10 }
  0x5d   : > { %798 = vmatmul.bf16.vlgmr.msra.gmra.mxu2 %v740_v9  ;;  %v850_v11 = vld.sshfl [vmem:[#allocation1 + $0x20] sm:$0xff pattern:$0x73625140] }
  0x5e   : > { %857 = vst [vmem:[#allocation1 + $0x20] ss:$4 sm:$0xff] %v830_v8  ;;  %v909_v32 = vunpack.c.l.b16 %v850_v11  ;;  %v924_v33 = vrot.slane %v908_v28, 1  ;;  %v987_v9 = vld [vmem:[%s1792_s11 + $0x2] sm:$0x2] }
  0x60   : > { %v925_v42 = vsel %vm706_vm0, %v909_v32, %v924_v33  ;;  %v994_v33 = vld [vmem:[%s1792_s11 + $0x10] sm:$0x2] }
  0x63   : > { %v854_v14 = vld.sshfl [vmem:[#allocation1] sm:$0xff pattern:$0x73625140] }
  0x64   : > { %861 = vst [vmem:[#allocation1] ss:$4 sm:$0xff] %v831_v12  ;;  %v910_v30 = vunpack.c.l.b16 %v854_v14 }
  0x65   : > { %v858_v15 = vld.sshfl [vmem:[#allocation1 + $0x20] sm:$0xff pattern:$0x73625140] }
  0x66   : > { %865 = vst [vmem:[#allocation1 + $0x20] ss:$4 sm:$0xff] %v832_v13  ;;  %v911_v36 = vunpack.c.l.b16 %v858_v15  ;;  %v926_v40 = vrot.slane %v910_v30, 7  ;;  %v993_v30 = vld [vmem:[%s1792_s11 + $0xe] sm:$0x2] }
  0x68   : > { %v928_v45 = vrot.slane %v911_v36, 6  ;;  %v927_v48 = vsel %vm709_vm1, %v926_v40, %v925_v42  ;;  %v573_v42 = vld [vmem:[%s407_s25] sm:$0xff] }
  0x6a   : > { %v929_v56 = vsel %vm712_vm2, %v928_v45, %v927_v48  ;;  %v1672_v45 = vmov 0  }
  0x6b   : > { %v862_v18 = vld.sshfl [vmem:[#allocation1] sm:$0xff pattern:$0x73625140]  ;;  %1616 = vset.pattern.permute.xlu1 %v1672_v45  ;;  %1615 = vset.pattern.permute.xlu0 %v1672_v45 }
  0x6c   : > { %869 = vst [vmem:[#allocation1] ss:$4 sm:$0xff] %v833_v16  ;;  %v912_v43 = vunpack.c.l.b16 %v862_v18  ;;  %577 = vperm.xlu0 %1615, %v573_v42   ;;  %1618 = vset.pattern.permute.xlu2 %v1672_v45  ;;  %v1148_v42 = vld [vmem:[%s1792_s11 + $0x6] sm:$0x2]  ;;  %v1149_v45 = vld [vmem:[%s1792_s11 + $0x8] sm:$0x2] }
  0x6d   : > { %v866_v19 = vld.sshfl [vmem:[#allocation1 + $0x20] sm:$0xff pattern:$0x73625140] }
  0x6e   : > { %873 = vst [vmem:[#allocation1 + $0x20] ss:$4 sm:$0xff] %v834_v17  ;;  %v913_v51 = vunpack.c.l.b16 %v866_v19  ;;  %v930_v53 = vrot.slane %v912_v43, 5  ;;  %v988_v19 = vld [vmem:[%s1792_s11 + $0x4] sm:$0x2] }
  0x70   : > { %v932_v61 = vrot.slane %v913_v51, 4  ;;  %v931_v63 = vsel %vm715_vm3, %v930_v53, %v929_v56  ;;  %v999_v51 = vld [vmem:[%s1792_s11 + $0x1a] sm:$0x2] }
  0x72   : > { %v933_v5 = vsel %vm718_vm4, %v932_v61, %v931_v63 }
  0x73   : > { %v870_v22 = vld.sshfl [vmem:[#allocation1] sm:$0xff pattern:$0x73625140] }
  0x74   : > { %877 = vst [vmem:[#allocation1] ss:$4 sm:$0xff] %v835_v20  ;;  %v914_v59 = vunpack.c.l.b16 %v870_v22  ;;  %v989_v22 = vld [vmem:[%s1792_s11 + $0x6] sm:$0x2] }
  0x75   : > { %v874_v23 = vld.sshfl [vmem:[#allocation1 + $0x20] sm:$0xff pattern:$0x73625140] }
  0x76   : > { %881 = vst [vmem:[#allocation1 + $0x20] ss:$4 sm:$0xff] %v836_v21  ;;  %v915_v1 = vunpack.c.l.b16 %v874_v23  ;;  %v934_v2 = vrot.slane %v914_v59, 3 }
  0x78   : > { %v936_v10 = vrot.slane %v915_v1, 2  ;;  %v935_v12 = vsel %vm721_vm5, %v934_v2, %v933_v5  ;;  %v1000_v1 = vld [vmem:[%s1792_s11 + $0x1c] sm:$0x2] }
  0x7a   : > { %v937_v16 = vsel %vm724_vm6, %v936_v10, %v935_v12 }
  0x7b   : > { %v878_v26 = vld.sshfl [vmem:[#allocation1] sm:$0xff pattern:$0x73625140] }
  0x7c   : > { %885 = vst [vmem:[#allocation1] ss:$4 sm:$0xff] %v837_v24  ;;  %v916_v31 = vunpack.c.l.b16 %v878_v26  ;;  %v991_v26 = vld [vmem:[%s1792_s11 + $0xa] sm:$0x2] }
  0x7d   : > { %v882_v27 = vld.sshfl [vmem:[#allocation1 + $0x20] sm:$0xff pattern:$0x73625140] }
  0x7e   : > { %889 = vst [vmem:[#allocation1 + $0x20] ss:$4 sm:$0xff] %v838_v25  ;;  %v917_v39 = vunpack.c.l.b16 %v882_v27  ;;  %v938_v41 = vrot.slane %v916_v31, 1  ;;  %v990_v25 = vld [vmem:[%s1792_s11 + $0x8] sm:$0x2] }
  0x80   : > { %v939_v49 = vsel %vm706_vm0, %v917_v39, %v938_v41  ;;  %v2004_v41 = vld [vmem:[%s1996_s13] sm:$0xff] }
  0x81   : > { %815 = vperm.xlu1 %1616, %v2004_v41  }
  0x83   : > { %v886_v35 = vld.sshfl [vmem:[#allocation1] sm:$0xff pattern:$0x73625140] }
  0x84   : > { %893 = vst [vmem:[#allocation1] ss:$4 sm:$0xff] %v839_v29  ;;  %v918_v37 = vunpack.c.l.b16 %v886_v35  ;;  %v992_v29 = vld [vmem:[%s1792_s11 + $0xc] sm:$0x2] }
  0x85   : > { %v890_v38 = vld.sshfl [vmem:[#allocation1 + $0x20] sm:$0xff pattern:$0x73625140] }
  0x86   : > { %897 = vst [vmem:[#allocation1 + $0x20] ss:$4 sm:$0xff] %v840_v34  ;;  %v919_v44 = vunpack.c.l.b16 %v890_v38  ;;  %v940_v46 = vrot.slane %v918_v37, 7  ;;  %v995_v34 = vld [vmem:[%s1792_s11 + $0x12] sm:$0x2] }
  0x87   : > { %v996_v37 = vld [vmem:[%s1792_s11 + $0x14] sm:$0x2]  ;;  %v997_v38 = vld [vmem:[%s1792_s11 + $0x16] sm:$0x2] }
  0x88   : > { %v942_v54 = vrot.slane %v919_v44, 6  ;;  %v941_v57 = vsel %vm709_vm1, %v940_v46, %v939_v49  ;;  %v998_v46 = vld [vmem:[%s1792_s11 + $0x18] sm:$0x2] }
  0x8a   : > { %v943_v0 = vsel %vm712_vm2, %v942_v54, %v941_v57  ;;  %v574_v54 = vld [vmem:[%s407_s25 + $0x8] sm:$0xff] }
  0x8b   : > { %v894_v52 = vld.sshfl [vmem:[#allocation1] sm:$0xff pattern:$0x73625140]  ;;  %582 = vperm.xlu0 %1615, %v574_v54   ;;  %v1154_v54 = vld [vmem:[%s1792_s11 + $0x12] sm:$0x2] }
  0x8c   : > { %901 = vst [vmem:[#allocation1] ss:$4 sm:$0xff] %v841_v47  ;;  %v920_v55 = vunpack.c.l.b16 %v894_v52 }
  0x8d   : > { %v898_v58 = vld.sshfl [vmem:[#allocation1 + $0x20] sm:$0xff pattern:$0x73625140] }
  0x8e   : > { %905 = vst [vmem:[#allocation1 + $0x20] ss:$4 sm:$0xff] %v842_v50  ;;  %v921_v60 = vunpack.c.l.b16 %v898_v58  ;;  %v944_v62 = vrot.slane %v920_v55, 5 }
  0x90   : > { %v946_v3 = vrot.slane %v921_v60, 4  ;;  %v945_v6 = vsel %vm715_vm3, %v944_v62, %v943_v0  ;;  %v1673_v62 = vmov 1  }
  0x91   : > { %1617 = vset.pattern.permute.xlu1 %v1673_v62 }
  0x92   : > { %v947_v13 = vsel %vm718_vm4, %v946_v3, %v945_v6  ;;  %975 = vperm.xlu1 %1617, %v2004_v41  }
  0x93   : > { %v902_v7 = vld.sshfl [vmem:[#allocation1] sm:$0xff pattern:$0x73625140] }
  0x94   : > { %v922_v8 = vunpack.c.l.b16 %v902_v7  ;;  %1003 = vst [vmem:[#allocation1] ss:$4 sm:$0xff] %v986_v4  ;;  %v1001_v4 = vld [vmem:[%s1792_s11 + $0x1e] sm:$0x2] }
  0x95   : > { %v906_v11 = vld.sshfl [vmem:[#allocation1 + $0x20] sm:$0xff pattern:$0x73625140] }
  0x96   : > { %v923_v14 = vunpack.c.l.b16 %v906_v11  ;;  %v948_v15 = vrot.slane %v922_v8, 3  ;;  %1008 = vst [vmem:[#allocation1 + $0x20] ss:$4 sm:$0xff] %v987_v9 }
  0x98   : > { %v949_v17 = vsel %vm721_vm5, %v948_v15, %v947_v13  ;;  %v950_v18 = vrot.slane %v923_v14, 2 }
  0x9a   : > { %v951_v20 = vsel %vm724_vm6, %v950_v18, %v949_v17 }
  0x9b   : > { %v952_v21 = vpack.c.b16 %v951_v20, %v937_v16  ;;  %v1004_v23 = vld.sshfl [vmem:[#allocation1] sm:$0xff pattern:$0x73625140] }
  0x9c   : > { %1012 = vst [vmem:[#allocation1] ss:$4 sm:$0xff] %v988_v19  ;;  %v1067_v43 = vunpack.c.l.b16 %v1004_v23  ;;  %v1674_v19 = vmov 2   ;;  %v1145_v23 = vld [vmem:[%s1792_s11] sm:$0x2] }
  0x9d   : > { %962 = vmatmul.bf16.vlgmr.msra.gmra.mxu3 %v952_v21  ;;  %v1009_v24 = vld.sshfl [vmem:[#allocation1 + $0x20] sm:$0xff pattern:$0x73625140]  ;;  %1620 = vset.pattern.permute.xlu0 %v1674_v19 }
  0x9e   : > { %1016 = vst [vmem:[#allocation1 + $0x20] ss:$4 sm:$0xff] %v989_v22  ;;  %v1068_v44 = vunpack.c.l.b16 %v1009_v24  ;;  %v1083_v49 = vrot.slane %v1067_v43, 2  ;;  %1621 = vset.pattern.permute.xlu1 %v1674_v19  ;;  %1134 = vperm.xlu0 %1620, %v2004_v41   ;;  %v1159_v19 = vld [vmem:[%s1792_s11 + $0x1c] sm:$0x2] }
  0xa0   : > { %v1084_v50 = vrot.slane %v1068_v44, 1 }
  0xa2   : > { %v1085_v59 = vsel %vm706_vm0, %v1084_v50, %v1083_v49  ;;  %v1151_v49 = vld [vmem:[%s1792_s11 + $0xc] sm:$0x2]  ;;  %v1152_v50 = vld [vmem:[%s1792_s11 + $0xe] sm:$0x2] }
  0xa3   : > { %v1013_v27 = vld.sshfl [vmem:[#allocation1] sm:$0xff pattern:$0x73625140] }
  0xa4   : > { %1020 = vst [vmem:[#allocation1] ss:$4 sm:$0xff] %v990_v25  ;;  %v1069_v56 = vunpack.c.l.b16 %v1013_v27  ;;  %v1146_v27 = vld [vmem:[%s1792_s11 + $0x2] sm:$0x2] }
  0xa5   : > { %v1017_v28 = vld.sshfl [vmem:[#allocation1 + $0x20] sm:$0xff pattern:$0x73625140] }
  0xa6   : > { %1024 = vst [vmem:[#allocation1 + $0x20] ss:$4 sm:$0xff] %v991_v26  ;;  %v1070_v53 = vunpack.c.l.b16 %v1017_v28  ;;  %v1086_v2 = vsel %vm709_vm1, %v1069_v56, %v1085_v59 }
  0xa8   : > { %v1087_v0 = vrot.slane %v1070_v53, 7  ;;  %v1153_v53 = vld [vmem:[%s1792_s11 + $0x10] sm:$0x2] }
  0xaa   : > { %v1088_v10 = vsel %vm712_vm2, %v1087_v0, %v1086_v2  ;;  %v1157_v2 = vld [vmem:[%s1792_s11 + $0x18] sm:$0x2] }
  0xab   : > { %v1021_v31 = vld.sshfl [vmem:[#allocation1] sm:$0xff pattern:$0x73625140] }
  0xac   : > { %1028 = vst [vmem:[#allocation1] ss:$4 sm:$0xff] %v992_v29  ;;  %v1071_v60 = vunpack.c.l.b16 %v1021_v31 }
  0xad   : > { %v1980_v32 = vld.sshfl [vmem:[#allocation1 + $0x20] sm:$0xff pattern:$0x73625140] }
  0xae   : > { %1032 = vst [vmem:[#allocation1 + $0x20] ss:$4 sm:$0xff] %v993_v30  ;;  %v1072_v5 = vunpack.c.l.b16 %v1980_v32  ;;  %v1089_v7 = vrot.slane %v1071_v60, 6 }
  0xb0   : > { %v1091_v15 = vrot.slane %v1072_v5, 5  ;;  %v1090_v17 = vsel %vm715_vm3, %v1089_v7, %v1088_v10 }
  0xb2   : > { %v1092_v24 = vsel %vm718_vm4, %v1091_v15, %v1090_v17 }
  0xb3   : > { %v1984_v35 = vld.sshfl [vmem:[#allocation1] sm:$0xff pattern:$0x73625140] }
  0xb4   : > { %1036 = vst [vmem:[#allocation1] ss:$4 sm:$0xff] %v994_v33  ;;  %v1073_v13 = vunpack.c.l.b16 %v1984_v35 }
  0xb5   : > { %v1986_v36 = vld.sshfl [vmem:[#allocation1 + $0x20] sm:$0xff pattern:$0x73625140] }
  0xb6   : > { %1040 = vst [vmem:[#allocation1 + $0x20] ss:$4 sm:$0xff] %v995_v34  ;;  %v1074_v20 = vunpack.c.l.b16 %v1986_v36  ;;  %v1093_v21 = vrot.slane %v1073_v13, 4 }
  0xb8   : > { %v1095_v29 = vrot.slane %v1074_v20, 3  ;;  %v1094_v31 = vsel %vm721_vm5, %v1093_v21, %v1092_v24 }
  0xba   : > { %v1096_v35 = vsel %vm724_vm6, %v1095_v29, %v1094_v31 }
  0xbb   : > { %v1037_v39 = vld.sshfl [vmem:[#allocation1] sm:$0xff pattern:$0x73625140] }
  0xbc   : > { %1044 = vst [vmem:[#allocation1] ss:$4 sm:$0xff] %v996_v37  ;;  %v1075_v47 = vunpack.c.l.b16 %v1037_v39 }
  0xbd   : > { %v1041_v40 = vld.sshfl [vmem:[#allocation1 + $0x20] sm:$0xff pattern:$0x73625140] }
  0xbe   : > { %1048 = vst [vmem:[#allocation1 + $0x20] ss:$4 sm:$0xff] %v997_v38  ;;  %v1076_v48 = vunpack.c.l.b16 %v1041_v40  ;;  %v1097_v57 = vrot.slane %v1075_v47, 2  ;;  %v1147_v38 = vld [vmem:[%s1792_s11 + $0x4] sm:$0x2] }
  0xc0   : > { %v1098_v58 = vrot.slane %v1076_v48, 1 }
  0xc2   : > { %v1099_v3 = vsel %vm706_vm0, %v1098_v58, %v1097_v57  ;;  %v1155_v57 = vld [vmem:[%s1792_s11 + $0x14] sm:$0x2]  ;;  %v1156_v58 = vld [vmem:[%s1792_s11 + $0x16] sm:$0x2] }
  0xc3   : > { %v1045_v52 = vld.sshfl [vmem:[#allocation1] sm:$0xff pattern:$0x73625140] }
  0xc4   : > { %1052 = vst [vmem:[#allocation1] ss:$4 sm:$0xff] %v998_v46  ;;  %v1077_v63 = vunpack.c.l.b16 %v1045_v52  ;;  %v1150_v46 = vld [vmem:[%s1792_s11 + $0xa] sm:$0x2] }
  0xc5   : > { %v1049_v55 = vld.sshfl [vmem:[#allocation1 + $0x20] sm:$0xff pattern:$0x73625140] }
  0xc6   : > { %1056 = vst [vmem:[#allocation1 + $0x20] ss:$4 sm:$0xff] %v999_v51  ;;  %v1078_v61 = vunpack.c.l.b16 %v1049_v55  ;;  %v1100_v11 = vsel %vm709_vm1, %v1077_v63, %v1099_v3 }
  0xc8   : > { %v1101_v9 = vrot.slane %v1078_v61, 7  ;;  %v607_v61 = vld [vmem:[%s1996_s13 + $0x8] sm:$0xff] }
  0xc9   : > { %1138 = vperm.xlu1 %1621, %v607_v61   ;;  %820 = vperm.xlu2 %1618, %v607_v61  }
  0xca   : > { %v1102_v18 = vsel %vm712_vm2, %v1101_v9, %v1100_v11  ;;  %v1158_v9 = vld [vmem:[%s1792_s11 + $0x1a] sm:$0x2] }
  0xcb   : > { %v1053_v6 = vld.sshfl [vmem:[#allocation1] sm:$0xff pattern:$0x73625140] }
  0xcc   : > { %1060 = vst [vmem:[#allocation1] ss:$4 sm:$0xff] %v1000_v1  ;;  %v1079_v8 = vunpack.c.l.b16 %v1053_v6  ;;  %v1675_v1 = vmov 3  }
  0xcd   : > { %v1057_v12 = vld.sshfl [vmem:[#allocation1 + $0x20] sm:$0xff pattern:$0x73625140]  ;;  %1624 = vset.pattern.permute.xlu0 %v1675_v1 }
  0xce   : > { %1064 = vst [vmem:[#allocation1 + $0x20] ss:$4 sm:$0xff] %v1001_v4  ;;  %v1080_v14 = vunpack.c.l.b16 %v1057_v12  ;;  %v1103_v16 = vrot.slane %v1079_v8, 6 }
  0xd0   : > { %v1105_v22 = vrot.slane %v1080_v14, 5  ;;  %v1104_v25 = vsel %vm715_vm3, %v1103_v16, %v1102_v18 }
  0xd1   : > { %1619 = vset.pattern.permute.xlu2 %v1673_v62  ;;  %1623 = vset.pattern.permute.xlu1 %v1675_v1 }
  0xd2   : > { %v1106_v32 = vsel %vm718_vm4, %v1105_v22, %v1104_v25  ;;  %979 = vperm.xlu2 %1619, %v607_v61   ;;  %1297 = vperm.xlu1 %1623, %v607_v61  }
  0xd3   : > { %v1061_v26 = vld.sshfl [vmem:[#allocation1] sm:$0xff pattern:$0x73625140] }
  0xd4   : > { %v1081_v28 = vunpack.c.l.b16 %v1061_v26  ;;  %1162 = vst [vmem:[#allocation1] ss:$4 sm:$0xff] %v1145_v23  ;;  %v1160_v23 = vld [vmem:[%s1792_s11 + $0x1e] sm:$0x2] }
  0xd5   : > { %v1065_v30 = vld.sshfl [vmem:[#allocation1 + $0x20] sm:$0xff pattern:$0x73625140] }
  0xd6   : > { %v1082_v33 = vunpack.c.l.b16 %v1065_v30  ;;  %v1107_v34 = vrot.slane %v1081_v28, 4  ;;  %1167 = vst [vmem:[#allocation1 + $0x20] ss:$4 sm:$0xff] %v1146_v27 }
  0xd8   : > { %v1108_v36 = vsel %vm721_vm5, %v1107_v34, %v1106_v32  ;;  %v1109_v37 = vrot.slane %v1082_v33, 3 }
  0xda   : > { %v1110_v39 = vsel %vm724_vm6, %v1109_v37, %v1108_v36  ;;  %1622 = vset.pattern.permute.xlu2 %v1675_v1 }
  0xdb   : > { %v1111_v40 = vpack.c.b16 %v1110_v39, %v1096_v35  ;;  %v1163_v43 = vld.sshfl [vmem:[#allocation1] sm:$0xff pattern:$0x73625140]  ;;  %1293 = vperm.xlu2 %1622, %v2004_v41  }
  0xdc   : > { %1171 = vst [vmem:[#allocation1] ss:$4 sm:$0xff] %v1147_v38  ;;  %v1226_v63 = vunpack.c.l.b16 %v1163_v43 }
  0xdd   : > { %1121 = vmatmul.bf16.vlgmr.msrb.gmra.mxu0 %v1111_v40  ;;  %v1168_v44 = vld.sshfl [vmem:[#allocation1 + $0x20] sm:$0xff pattern:$0x73625140] }
  0xde   : > { %1175 = vst [vmem:[#allocation1 + $0x20] ss:$4 sm:$0xff] %v1148_v42  ;;  %v1227_v0 = vunpack.c.l.b16 %v1168_v44  ;;  %v1242_v6 = vrot.slane %v1226_v63, 3 }
  0xe0   : > { %v1243_v7 = vrot.slane %v1227_v0, 2 }
  0xe2   : > { %v1244_v15 = vsel %vm706_vm0, %v1243_v7, %v1242_v6  ;;  %v1626_v7 = vld [vmem:[%s2094_s7] ss:$0 sm:$0xff] }
  0xe3   : > { %v1172_v47 = vld.sshfl [vmem:[#allocation1] sm:$0xff pattern:$0x73625140] }
  0xe4   : > { %1179 = vst [vmem:[#allocation1] ss:$4 sm:$0xff] %v1149_v45  ;;  %v1228_v3 = vunpack.c.l.b16 %v1172_v47 }
  0xe5   : > { %v1176_v48 = vld.sshfl [vmem:[#allocation1 + $0x20] sm:$0xff pattern:$0x73625140] }
  0xe6   : > { %1183 = vst [vmem:[#allocation1 + $0x20] ss:$4 sm:$0xff] %v1150_v46  ;;  %v1245_v12 = vrot.slane %v1228_v3, 1  ;;  %v1229_v17 = vunpack.c.l.b16 %v1176_v48  ;;  %v799_v3 = vpop.f32.mrf.mxu2 }
  0xe8   : > { %v1246_v20 = vsel %vm709_vm1, %v1245_v12, %v1244_v15 }
  0xe9   : > { %v1247_v62 = vsel %vm712_vm2, %v1229_v17, %v1246_v20 }
  0xeb   : > { %v1180_v51 = vld.sshfl [vmem:[#allocation1] sm:$0xff pattern:$0x73625140] }
  0xec   : > { %1187 = vst [vmem:[#allocation1] ss:$4 sm:$0xff] %v1151_v49  ;;  %v1230_v16 = vunpack.c.l.b16 %v1180_v51 }
  0xed   : > { %v1184_v52 = vld.sshfl [vmem:[#allocation1 + $0x20] sm:$0xff pattern:$0x73625140] }
  0xee   : > { %1191 = vst [vmem:[#allocation1 + $0x20] ss:$4 sm:$0xff] %v1152_v50  ;;  %v1231_v22 = vunpack.c.l.b16 %v1184_v52  ;;  %v1248_v26 = vrot.slane %v1230_v16, 7  ;;  %v801_v15 = vpop.f32.mrf.mxu2 }
  0xf0   : > { %v1250_v32 = vrot.slane %v1231_v22, 6  ;;  %v1249_v34 = vsel %vm715_vm3, %v1248_v26, %v1247_v62 }
  0xf2   : > { %v1251_v39 = vsel %vm718_vm4, %v1250_v32, %v1249_v34 }
  0xf3   : > { %v2041_v55 = vld.sshfl [vmem:[#allocation1] sm:$0xff pattern:$0x73625140] }
  0xf4   : > { %1195 = vst [vmem:[#allocation1] ss:$4 sm:$0xff] %v1153_v53  ;;  %v1232_v30 = vunpack.c.l.b16 %v2041_v55  ;;  %v546_v55 = vpop.f32.mrf.mxu0 }
  0xf5   : > { %v2043_v56 = vld.sshfl [vmem:[#allocation1 + $0x20] sm:$0xff pattern:$0x73625140] }
  0xf6   : > { %1199 = vst [vmem:[#allocation1 + $0x20] ss:$4 sm:$0xff] %v1154_v54  ;;  %v1233_v36 = vunpack.c.l.b16 %v2043_v56  ;;  %v1252_v37 = vrot.slane %v1232_v30, 5  ;;  %v1625_v54 = vld [vmem:[%s2092_s5] ss:$0 sm:$0xff] }
  0xf7   : > { %v569_v56 = vadd.f32 %v1625_v54, %v546_v55 }
  0xf8   : > { %v1254_v44 = vrot.slane %v1233_v36, 4  ;;  %v1253_v46 = vsel %vm721_vm5, %v1252_v37, %v1251_v39 }
  0xfa   : > { %v1255_v50 = vsel %vm724_vm6, %v1254_v44, %v1253_v46 }
  0xfb   : > { %v1196_v59 = vld.sshfl [vmem:[#allocation1] sm:$0xff pattern:$0x73625140] }
  0xfc   : > { %1203 = vst [vmem:[#allocation1] ss:$4 sm:$0xff] %v1155_v57  ;;  %v1234_v4 = vunpack.c.l.b16 %v1196_v59  ;;  %v571_v57 = vmax.f32 %v569_v56, 0.0 }
  0xfd   : > { %v1200_v60 = vld.sshfl [vmem:[#allocation1 + $0x20] sm:$0xff pattern:$0x73625140] }
  0xfe   : > { %1207 = vst [vmem:[#allocation1 + $0x20] ss:$4 sm:$0xff] %v1156_v58  ;;  %v1235_v5 = vunpack.c.l.b16 %v1200_v60  ;;  %v1256_v13 = vrot.slane %v1234_v4, 3  ;;  %v578_v58 = vpop.permute.xlu0 %577  ;;  %v548_v60 = vpop.f32.mrf.mxu0 }
  0xff   : > { %v585_v59 = vmul.f32 %v578_v58, %v571_v57  ;;  %v570_v61 = vadd.f32 %v1625_v54, %v548_v60 }
 0x100   : > { %v1257_v14 = vrot.slane %v1235_v5, 2  ;;  %v816_v5 = vpop.permute.xlu1 %815 }
 0x101   : > { %587 = vst [vmem:[%s425_s18] sm:$0xff] %v585_v59  ;;  %v572_v63 = vmax.f32 %v570_v61, 0.0 }
 0x102   : > { %v1258_v21 = vsel %vm706_vm0, %v1257_v14, %v1256_v13 }
 0x103   : > { %v1204_v8 = vld.sshfl [vmem:[#allocation1] sm:$0xff pattern:$0x73625140] }
 0x104   : > { %1211 = vst [vmem:[#allocation1] ss:$4 sm:$0xff] %v1157_v2  ;;  %v1236_v10 = vunpack.c.l.b16 %v1204_v8  ;;  %v560_v2 = vpop.f32.mrf.mxu1 }
 0x105   : > { %v1208_v11 = vld.sshfl [vmem:[#allocation1 + $0x20] sm:$0xff pattern:$0x73625140]  ;;  %v804_v6 = vadd.f32 %v799_v3, %v560_v2 }
 0x106   : > { %1215 = vst [vmem:[#allocation1 + $0x20] ss:$4 sm:$0xff] %v1158_v9  ;;  %v1259_v18 = vrot.slane %v1236_v10, 1  ;;  %v1237_v25 = vunpack.c.l.b16 %v1208_v11  ;;  %v583_v0 = vpop.permute.xlu0 %582 }
 0x107   : > { %v586_v1 = vmul.f32 %v583_v0, %v572_v63  ;;  %v809_v11 = vadd.f32 %v1626_v7, %v804_v6 }
 0x108   : > { %v1260_v28 = vsel %vm709_vm1, %v1259_v18, %v1258_v21  ;;  %v976_v18 = vpop.permute.xlu1 %975 }
 0x109   : > { %v1261_v35 = vsel %vm712_vm2, %v1237_v25, %v1260_v28  ;;  %588 = vst [vmem:[%s425_s18 + $0x8] sm:$0xff] %v586_v1  ;;  %v811_v17 = vmax.f32 %v809_v11, 0.0 }
 0x10b   : > { %v1212_v24 = vld.sshfl [vmem:[#allocation1] sm:$0xff pattern:$0x73625140]  ;;  %v823_v25 = vmul.f32 %v816_v5, %v811_v17 }
 0x10c   : > { %1219 = vst [vmem:[#allocation1] ss:$4 sm:$0xff] %v1159_v19  ;;  %v1238_v27 = vunpack.c.l.b16 %v1212_v24  ;;  %v562_v14 = vpop.f32.mrf.mxu1 }
 0x10d   : > { %v1216_v29 = vld.sshfl [vmem:[#allocation1 + $0x20] sm:$0xff pattern:$0x73625140]  ;;  %v805_v20 = vadd.f32 %v801_v15, %v562_v14 }
 0x10e   : > { %1223 = vst [vmem:[#allocation1 + $0x20] ss:$4 sm:$0xff] %v1160_v23  ;;  %v1239_v31 = vunpack.c.l.b16 %v1216_v29  ;;  %v1262_v33 = vrot.slane %v1238_v27, 7 }
 0x10f   : > { %v810_v27 = vadd.f32 %v1626_v7, %v805_v20 }
 0x110   : > { %v1264_v38 = vrot.slane %v1239_v31, 6  ;;  %v1263_v40 = vsel %vm715_vm3, %v1262_v33, %v1261_v35  ;;  %v1135_v30 = vpop.permute.xlu0 %1134 }
 0x111   : > { %v812_v34 = vmax.f32 %v810_v27, 0.0 }
 0x112   : > { %v1265_v47 = vsel %vm718_vm4, %v1264_v38, %v1263_v40 }
 0x113   : > { %v1220_v42 = vld.sshfl [vmem:[#allocation1] sm:$0xff pattern:$0x73625140] }
 0x114   : > { %v1240_v43 = vunpack.c.l.b16 %v1220_v42 }
 0x115   : > { %v1224_v45 = vld.sshfl [vmem:[#allocation1 + $0x20] sm:$0xff pattern:$0x73625140] }
 0x116   : > { %v1241_v48 = vunpack.c.l.b16 %v1224_v45  ;;  %v1266_v49 = vrot.slane %v1240_v43, 5 }
 0x118   : > { %v1267_v41 = vsel %vm721_vm5, %v1266_v49, %v1265_v47  ;;  %v1268_v51 = vrot.slane %v1241_v48, 4 }
 0x11a   : > { %v1269_v52 = vsel %vm724_vm6, %v1268_v51, %v1267_v41 }
 0x11b   : > { %v1270_v53 = vpack.c.b16 %v1269_v52, %v1255_v50 }
 0x11d   : > { %1280 = vmatmul.bf16.vlgmr.msrb.gmra.mxu1 %v1270_v53 }
 0x120   : > { %v963_v4 = vpop.f32.mrf.mxu3 }
 0x121   : > { %v968_v9 = vadd.f32 %v963_v4, %v560_v2 }
 0x123   : > { %v821_v10 = vpop.permute.xlu2 %820  ;;  %v970_v12 = vadd.f32 %v1626_v7, %v968_v9 }
 0x124   : > { %v824_v43 = vmul.f32 %v821_v10, %v812_v34 }
 0x125   : > { %v972_v19 = vmax.f32 %v970_v12, 0.0 }
 0x127   : > { %v982_v26 = vmul.f32 %v976_v18, %v972_v19 }
 0x128   : > { %v965_v16 = vpop.f32.mrf.mxu3 }
 0x129   : > { %v969_v22 = vadd.f32 %v965_v16, %v562_v14  ;;  %v984_v33 = vadd.f32 %v982_v26, %v823_v25 }
 0x12b   : > { %v971_v62 = vadd.f32 %v1626_v7, %v969_v22 }
 0x12c   : > { %v980_v24 = vpop.permute.xlu2 %979 }
 0x12d   : > { %v973_v36 = vmax.f32 %v971_v62, 0.0 }
 0x12f   : > { %v983_v44 = vmul.f32 %v980_v24, %v973_v36 }
 0x131   : > { %v985_v41 = vadd.f32 %v983_v44, %v824_v43 }
 0x135   : > { %v1294_v40 = vpop.permute.xlu2 %1293 }
 0x13b   : > { %v1139_v39 = vpop.permute.xlu1 %1138 }
 0x144   : > { %v1298_v53 = vpop.permute.xlu1 %1297 }
 0x15a   : > { %v1122_v8 = vpop.f32.mrf.mxu0 }
 0x15b   : > { %v1127_v13 = vadd.f32 %v1122_v8, %v560_v2 }
 0x15d   : > { %v1129_v21 = vadd.f32 %v1626_v7, %v1127_v13 }
 0x15f   : > { %v1131_v29 = vmax.f32 %v1129_v21, 0.0 }
 0x161   : > { %v1141_v37 = vmul.f32 %v1135_v30, %v1131_v29 }
 0x162   : > { %v1124_v23 = vpop.f32.mrf.mxu0 }
 0x163   : > { %v1128_v28 = vadd.f32 %v1124_v23, %v562_v14  ;;  %v1143_v45 = vadd.f32 %v1141_v37, %v984_v33 }
 0x165   : > { %v1130_v35 = vadd.f32 %v1626_v7, %v1128_v28 }
 0x167   : > { %v1132_v46 = vmax.f32 %v1130_v35, 0.0 }
 0x169   : > { %v1142_v51 = vmul.f32 %v1139_v39, %v1132_v46 }
 0x16b   : > { %v1144_v55 = vadd.f32 %v1142_v51, %v985_v41 }
 0x19a   : > { %v1281_v31 = vpop.f32.mrf.mxu1 }
 0x19b   : > { %v1286_v32 = vadd.f32 %v1281_v31, %v560_v2 }
 0x19d   : > { %v1288_v38 = vadd.f32 %v1626_v7, %v1286_v32 }
 0x19f   : > { %v1290_v42 = vmax.f32 %v1288_v38, 0.0 }
 0x1a1   : > { %v1300_v47 = vmul.f32 %v1294_v40, %v1290_v42 }
 0x1a2   : > { %v1283_v48 = vpop.f32.mrf.mxu1 }
 0x1a3   : > { %v1302_v49 = vadd.f32 %v1300_v47, %v1143_v45  ;;  %v1287_v50 = vadd.f32 %v1283_v48, %v562_v14 }
 0x1a5   : > { %1304 = vst [vmem:[%s431_s15] sm:$0xff] %v1302_v49  ;;  %v1289_v52 = vadd.f32 %v1626_v7, %v1287_v50 }
 0x1a7   : > { %v1291_v54 = vmax.f32 %v1289_v52, 0.0 }
 0x1a9   : > { %v1301_v56 = vmul.f32 %v1298_v53, %v1291_v54 }
 0x1ab   : > { %v1303_v57 = vadd.f32 %v1301_v56, %v1144_v55 }
 0x1ad   : > { %1305 = vst [vmem:[%s431_s15 + $0x8] sm:$0xff] %v1303_v57 }
 0x1ae PF: > { %s21_s30 = sadd.s32 1, %s1667_s30  }
 0x1af   : > { %p18_p8 = scmp.ge.s32.totalorder %s21_s30, 4  }
 0x1b1   :  { %20 = sbr.rel (!%p18_p8) target bundleno = 1 (0x1), region = 112 }
 0x1b6   :  { %1345 = vsyncpa [#allocation3], 1 }
 0x1b7   :  { %1347 = vsyncpa [#allocation3 + $0x1], 1 }

</bundles_post_ra>
